<compile_context>
chip_gen: v7x
topology: tpu7x:2x2x1
jax: 0.10.0
libtpu: 0.0.40
codegen_flags: <defaults>
</compile_context>

<pallas_src>
import functools

import jax
import jax.numpy as jnp
from jax.experimental import pallas as pl
from jax.experimental.pallas import tpu as pltpu


def _round_up(n, m):
    return ((n + m - 1) // m) * m


def _mlp_kernel(x_ref, w1_ref, b1_ref, w2_ref, b2_ref, w3_ref, b3_ref, o_ref):
    # Matmul operands in the weight dtype (f32 or bf16); accumulate in f32.
    wdt = w1_ref.dtype
    x = x_ref[...].astype(wdt)

    # Dense 1: (TB, D_in) @ (D_in, 1024) + b1, ReLU.  Bias add / ReLU in f32.
    h1 = jnp.dot(x, w1_ref[...], preferred_element_type=jnp.float32)
    h1 = jnp.maximum(h1 + b1_ref[...], 0.0)
    # dropout -> identity (eval mode)

    # Dense 2: (TB, 1024) @ (1024, 512) + b2, ReLU.
    h2 = jnp.dot(h1.astype(wdt), w2_ref[...], preferred_element_type=jnp.float32)
    h2 = jnp.maximum(h2 + b2_ref[...], 0.0)
    # dropout -> identity (eval mode)

    # Output layer: (TB, 512) @ (512, D_out_padded) + b3 (lane-dense store).
    out = jnp.dot(h2.astype(wdt), w3_ref[...], preferred_element_type=jnp.float32)
    out = out + b3_ref[...]
    o_ref[...] = out.astype(o_ref.dtype)


@functools.partial(jax.jit, static_argnames=("block_b", "weights_dtype"))
def combined_dense_block(x, params, *, block_b=256, weights_dtype=None):
    """x: (B, input_dim) float32.  params: dict of W1,b1,W2,b2,W3,b3 (W as (in,out))."""
    w1, b1 = params["W1"], params["b1"]
    w2, b2 = params["W2"], params["b2"]
    w3, b3 = params["W3"], params["b3"]

    B, D_in = x.shape
    H1 = w1.shape[1]          # 1024
    H2 = w2.shape[1]          # 512
    D_out = w3.shape[1]       # output_size

    # Optional bf16 weights (matmul operands only; biases stay f32).
    if weights_dtype is not None:
        w1 = w1.astype(weights_dtype)
        w2 = w2.astype(weights_dtype)
        w3 = w3.astype(weights_dtype)

    # --- Lane-dense output: pad output columns to a multiple of 128. ---
    D_out_p = _round_up(max(D_out, 128), 128)
    if D_out_p != D_out:
        w3 = jnp.pad(w3, ((0, 0), (0, D_out_p - D_out)))
        b3 = jnp.pad(b3, ((0, D_out_p - D_out),))

    # Biases as (1, H) f32 rows (broadcast inside the kernel).
    b1 = b1.reshape(1, H1).astype(jnp.float32)
    b2 = b2.reshape(1, H2).astype(jnp.float32)
    b3 = b3.reshape(1, D_out_p).astype(jnp.float32)

    # --- Batch tiling: tile size multiple of 8, pad batch to a tile multiple. ---
    TB = _round_up(min(block_b, _round_up(B, 8)), 8)
    B_p = _round_up(B, TB)
    if B_p != B:
        x = jnp.pad(x, ((0, B_p - B), (0, 0)))
    grid = (B_p // TB,)

    in_specs = [
        pl.BlockSpec((TB, D_in), lambda i: (i, 0)),     # x tile: pipelines over batch
        pl.BlockSpec((D_in, H1), lambda i: (0, 0)),     # weights/biases: VMEM-resident,
        pl.BlockSpec((1, H1),    lambda i: (0, 0)),     # DMA'd once across all grid steps
        pl.BlockSpec((H1, H2),   lambda i: (0, 0)),
        pl.BlockSpec((1, H2),    lambda i: (0, 0)),
        pl.BlockSpec((H2, D_out_p), lambda i: (0, 0)),
        pl.BlockSpec((1, D_out_p),  lambda i: (0, 0)),
    ]
    out_specs = pl.BlockSpec((TB, D_out_p), lambda i: (i, 0))

    flops = 2 * B_p * (D_in * H1 + H1 * H2 + H2 * D_out_p)
    bytes_accessed = int(
        x.size * x.dtype.itemsize
        + w1.size * w1.dtype.itemsize + w2.size * w2.dtype.itemsize
        + w3.size * w3.dtype.itemsize
        + b1.size * 4 + b2.size * 4 + b3.size * 4
        + B_p * D_out_p * x.dtype.itemsize
    )

    out = pl.pallas_call(
        _mlp_kernel,
        out_shape=jax.ShapeDtypeStruct((B_p, D_out_p), x.dtype),
        grid=grid,
        in_specs=in_specs,
        out_specs=out_specs,
        compiler_params=pltpu.CompilerParams(
            dimension_semantics=("parallel",),
        ),
        cost_estimate=pl.CostEstimate(
            flops=flops, transcendentals=0, bytes_accessed=bytes_accessed),
    )(x, w1, b1, w2, b2, w3, b3)

    # Strip batch and lane padding.
    return out[:B, :D_out]


def init_params(key, input_dim, output_size):
    """Deterministic synthetic parameters (Kaiming-ish uniform scaling)."""
    ks = jax.random.split(key, 6)

    def lin(kw, kb, fan_in, fan_out):
        bound = 1.0 / jnp.sqrt(fan_in)
        # stored as (in, out) so kernel computes x @ W
        W = jax.random.uniform(kw, (fan_in, fan_out), jnp.float32, -bound, bound)
        b = jax.random.uniform(kb, (fan_out,), jnp.float32, -bound, bound)
        return W, b

    W1, b1 = lin(ks[0], ks[1], input_dim, 1024)
    W2, b2 = lin(ks[2], ks[3], 1024, 512)
    W3, b3 = lin(ks[4], ks[5], 512, output_size)
    return {"W1": W1, "b1": b1, "W2": W2, "b2": b2, "W3": W3, "b3": b3}


def reference(x, p):
    h = jnp.maximum(x @ p["W1"] + p["b1"], 0.0)
    h = jnp.maximum(h @ p["W2"] + p["b2"], 0.0)
    return h @ p["W3"] + p["b3"]


if __name__ == "__main__":
    key = jax.random.PRNGKey(0)
    k_x, k_p, k_x2 = jax.random.split(key, 3)

    B, INPUT_DIM, OUTPUT_SIZE = 8, 32, 16
    x = jax.random.normal(k_x, (B, INPUT_DIM), jnp.float32)
    params = init_params(k_p, INPUT_DIM, OUTPUT_SIZE)
    ref = reference(x, params)

    # 1) f32 path — strict check against the reference.
    out = jax.block_until_ready(combined_dense_block(x, params))
    assert out.shape == (B, OUTPUT_SIZE), out.shape
    assert jnp.allclose(out, ref, atol=1e-4, rtol=1e-4), "f32 mismatch vs reference"

    # 2) bf16-weight path (halves weight HBM traffic) — loose tolerance.
    out_bf16 = jax.block_until_ready(
        combined_dense_block(x, params, weights_dtype=jnp.bfloat16))
    assert out_bf16.shape == (B, OUTPUT_SIZE)
    assert jnp.allclose(out_bf16, ref, atol=5e-2, rtol=5e-2), "bf16 mismatch vs reference"

    # 3) Batch size that is not a multiple of 8 / of the tile — exercises padding.
    B2 = 37
    x2 = jax.random.normal(k_x2, (B2, INPUT_DIM), jnp.float32)
    out2 = jax.block_until_ready(combined_dense_block(x2, params))
    assert out2.shape == (B2, OUTPUT_SIZE)
    assert jnp.allclose(out2, reference(x2, params), atol=1e-4, rtol=1e-4), \
        "padded-batch mismatch vs reference"

    print("KERNEL_OK")
</pallas_src>

<mosaic_0001>
module attributes {stable_mosaic.version = 11 : i64} {
  func.func @_mlp_kernel(%arg0: i32, %arg1: memref<8x32xf32, #tpu.memory_space<vmem>>, %arg2: memref<32x1024xf32, #tpu.memory_space<vmem>>, %arg3: memref<1x1024xf32, #tpu.memory_space<vmem>>, %arg4: memref<1024x512xf32, #tpu.memory_space<vmem>>, %arg5: memref<1x512xf32, #tpu.memory_space<vmem>>, %arg6: memref<512x128xf32, #tpu.memory_space<vmem>>, %arg7: memref<1x128xf32, #tpu.memory_space<vmem>>, %arg8: memref<8x128xf32, #tpu.memory_space<vmem>>) attributes {dimension_semantics = [#tpu.dimension_semantics<parallel>], iteration_bounds = array<i64: 1>, scalar_prefetch = 0 : i64, scratch_operands = 0 : i64, tpu.core_type = #tpu.core_type<tc>, window_params = [{transform_indices = @transform_0, window_bounds = array<i64: 8, 32>}, {pipeline_mode = #tpu.pipeline_mode<synchronous>, transform_indices = @transform_1, window_bounds = array<i64: 32, 1024>}, {pipeline_mode = #tpu.pipeline_mode<synchronous>, transform_indices = @transform_2, window_bounds = array<i64: 1, 1024>}, {pipeline_mode = #tpu.pipeline_mode<synchronous>, transform_indices = @transform_3, window_bounds = array<i64: 1024, 512>}, {pipeline_mode = #tpu.pipeline_mode<synchronous>, transform_indices = @transform_4, window_bounds = array<i64: 1, 512>}, {pipeline_mode = #tpu.pipeline_mode<synchronous>, transform_indices = @transform_5, window_bounds = array<i64: 512, 128>}, {pipeline_mode = #tpu.pipeline_mode<synchronous>, transform_indices = @transform_6, window_bounds = array<i64: 1, 128>}, {transform_indices = @transform_7, window_bounds = array<i64: 8, 128>}]} {
    %c0 = arith.constant 0 : index
    %c0_0 = arith.constant 0 : index
    %0 = vector.load %arg1[%c0, %c0_0] : memref<8x32xf32, #tpu.memory_space<vmem>>, vector<8x32xf32>
    %c0_1 = arith.constant 0 : index
    %c0_2 = arith.constant 0 : index
    %1 = vector.load %arg2[%c0_1, %c0_2] : memref<32x1024xf32, #tpu.memory_space<vmem>>, vector<32x1024xf32>
    %cst = arith.constant dense<0.000000e+00> : vector<8x1024xf32>
    %2 = tpu.matmul %0, %1, %cst {dimension_numbers = #tpu.dot_dimension_numbers<[1], [0], [0], [1], [0, 0, 1, 1], [], []>} : vector<8x32xf32>, vector<32x1024xf32>, vector<8x1024xf32> -> vector<8x1024xf32>
    %c0_3 = arith.constant 0 : index
    %c0_4 = arith.constant 0 : index
    %3 = vector.load %arg3[%c0_3, %c0_4] : memref<1x1024xf32, #tpu.memory_space<vmem>>, vector<1x1024xf32>
    %4 = vector.broadcast %3 : vector<1x1024xf32> to vector<8x1024xf32>
    %5 = arith.addf %2, %4 : vector<8x1024xf32>
    %cst_5 = arith.constant 0.000000e+00 : f32
    %6 = vector.broadcast %cst_5 : f32 to vector<8x1024xf32>
    %7 = arith.maximumf %5, %6 : vector<8x1024xf32>
    %c0_6 = arith.constant 0 : index
    %c0_7 = arith.constant 0 : index
    %8 = vector.load %arg4[%c0_6, %c0_7] : memref<1024x512xf32, #tpu.memory_space<vmem>>, vector<1024x512xf32>
    %cst_8 = arith.constant dense<0.000000e+00> : vector<8x512xf32>
    %9 = tpu.matmul %7, %8, %cst_8 {dimension_numbers = #tpu.dot_dimension_numbers<[1], [0], [0], [1], [0, 0, 1, 1], [], []>} : vector<8x1024xf32>, vector<1024x512xf32>, vector<8x512xf32> -> vector<8x512xf32>
    %c0_9 = arith.constant 0 : index
    %c0_10 = arith.constant 0 : index
    %10 = vector.load %arg5[%c0_9, %c0_10] : memref<1x512xf32, #tpu.memory_space<vmem>>, vector<1x512xf32>
    %11 = vector.broadcast %10 : vector<1x512xf32> to vector<8x512xf32>
    %12 = arith.addf %9, %11 : vector<8x512xf32>
    %cst_11 = arith.constant 0.000000e+00 : f32
    %13 = vector.broadcast %cst_11 : f32 to vector<8x512xf32>
    %14 = arith.maximumf %12, %13 : vector<8x512xf32>
    %c0_12 = arith.constant 0 : index
    %c0_13 = arith.constant 0 : index
    %15 = vector.load %arg6[%c0_12, %c0_13] : memref<512x128xf32, #tpu.memory_space<vmem>>, vector<512x128xf32>
    %cst_14 = arith.constant dense<0.000000e+00> : vector<8x128xf32>
    %16 = tpu.matmul %14, %15, %cst_14 {dimension_numbers = #tpu.dot_dimension_numbers<[1], [0], [0], [1], [0, 0, 1, 1], [], []>} : vector<8x512xf32>, vector<512x128xf32>, vector<8x128xf32> -> vector<8x128xf32>
    %c0_15 = arith.constant 0 : index
    %c0_16 = arith.constant 0 : index
    %17 = vector.load %arg7[%c0_15, %c0_16] : memref<1x128xf32, #tpu.memory_space<vmem>>, vector<1x128xf32>
    %18 = vector.broadcast %17 : vector<1x128xf32> to vector<8x128xf32>
    %19 = arith.addf %16, %18 : vector<8x128xf32>
    %c0_17 = arith.constant 0 : index
    %c0_18 = arith.constant 0 : index
    %20 = vector.load %arg8[%c0_17, %c0_18] : memref<8x128xf32, #tpu.memory_space<vmem>>, vector<8x128xf32>
    tpu.vector_store %arg8[%c0_17, %c0_18], %19 {strides = array<i32>} : memref<8x128xf32, #tpu.memory_space<vmem>>, vector<8x128xf32>,
    return
  }
  func.func @transform_0(%arg0: i32) -> (i32, i32) {
    %c0_i32 = arith.constant 0 : i32
    %c0_i32_0 = arith.constant 0 : i32
    return %arg0, %c0_i32 : i32, i32
  }
  func.func @transform_1(%arg0: i32) -> (i32, i32) {
    %c0_i32 = arith.constant 0 : i32
    %c0_i32_0 = arith.constant 0 : i32
    %c0_i32_1 = arith.constant 0 : i32
    return %c0_i32, %c0_i32_0 : i32, i32
  }
  func.func @transform_2(%arg0: i32) -> (i32, i32) {
    %c0_i32 = arith.constant 0 : i32
    %c0_i32_0 = arith.constant 0 : i32
    %c0_i32_1 = arith.constant 0 : i32
    return %c0_i32, %c0_i32_0 : i32, i32
  }
  func.func @transform_3(%arg0: i32) -> (i32, i32) {
    %c0_i32 = arith.constant 0 : i32
    %c0_i32_0 = arith.constant 0 : i32
    %c0_i32_1 = arith.constant 0 : i32
    return %c0_i32, %c0_i32_0 : i32, i32
  }
  func.func @transform_4(%arg0: i32) -> (i32, i32) {
    %c0_i32 = arith.constant 0 : i32
    %c0_i32_0 = arith.constant 0 : i32
    %c0_i32_1 = arith.constant 0 : i32
    return %c0_i32, %c0_i32_0 : i32, i32
  }
  func.func @transform_5(%arg0: i32) -> (i32, i32) {
    %c0_i32 = arith.constant 0 : i32
    %c0_i32_0 = arith.constant 0 : i32
    %c0_i32_1 = arith.constant 0 : i32
    return %c0_i32, %c0_i32_0 : i32, i32
  }
  func.func @transform_6(%arg0: i32) -> (i32, i32) {
    %c0_i32 = arith.constant 0 : i32
    %c0_i32_0 = arith.constant 0 : i32
    %c0_i32_1 = arith.constant 0 : i32
    return %c0_i32, %c0_i32_0 : i32, i32
  }
  func.func @transform_7(%arg0: i32) -> (i32, i32) {
    %c0_i32 = arith.constant 0 : i32
    %c0_i32_0 = arith.constant 0 : i32
    return %arg0, %c0_i32 : i32, i32
  }
}

</mosaic_0001>

<bundles_post_ra>
// kernel: combined_dense_block.1
= control target key start
LH: loop header
LB: loop body
LE: loop exit
PB: predicated region body
PF: predicated region fallthrough
CT: control target
= control target key end

     0   :  { %12 = vsyncpa [#allocation3], 0  ;;  %s3031_s0 = inlined_call_operand.hbm [shape: f32[8,32], index: 0, kind: input, shape index: {}]   ;;  %s3032_s1 = inlined_call_operand.hbm [shape: f32[32,1024], index: 1, kind: input, shape index: {}]   ;;  %s3033_s2 = inlined_call_operand.hbm [shape: f32[1,1024], index: 2, kind: input, shape index: {}]   ;;  %s3034_s3 = inlined_call_operand.hbm [shape: f32[1024,512], index: 3, kind: input, shape index: {}]   ;;  %s3035_s4 = inlined_call_operand.hbm [shape: f32[1,512], index: 4, kind: input, shape index: {}]   ;;  %s3036_s5 = inlined_call_operand.vmem [shape: f32[512,128], index: 5, kind: input, shape index: {}]   ;;  %s3037_s6 = inlined_call_operand.vmem [shape: f32[1,128], index: 6, kind: input, shape index: {}]   ;;  %s3038_s7 = inlined_call_operand.hbm [shape: f32[8,128], index: 7, kind: output, shape index: {}]  }
   0x1   :  { %13 = vsyncpa [#allocation6], 0 }
   0x2   :  { %14 = vsyncpa [#allocation9], 0 }
   0x3   :  { %15 = vsyncpa [#allocation4], 0  ;;  %s2646_s24 = smov [#allocation5]   ;;  %s2506_s28 = scalar_lea.hbm %s3032_s1, 4096 }
   0x4   :  { %s31_s25 = sshll.u32 %s2646_s24, 4  ;;  %p2507_p0 = scmp.ne.s32.totalorder %s3032_s1, %s2506_s28  ;;  %s32_s25 = int_to_ptr.vmem [resolvable:$true] %s31_s25 }
   0x5   :  { %p2510_p1 = scmp.lt.u32.totalorder %s2506_s28, %s3032_s1 }
   0x7   :  { %p2512_p2 = pnand %p2510_p1, %p2507_p0 }
   0x9   :  { %2515 = shalt.err (!%p2512_p2)
}
   0xa   :  { %s2516_s10 = scalar_lea.vmem %s32_s25, 4096  ;;  %p2521_p4 = scmp.lt.s32.totalorder %s32_s25, %s32_s25 }
   0xb   :  { %p2517_p3 = scmp.ne.s32.totalorder %s32_s25, %s2516_s10  ;;  %p2522_p5 = scmp.lt.s32.totalorder %s2516_s10, %s2516_s10 }
   0xd   :  { %p2523_p6 = por %p2522_p5, %p2521_p4 }
   0xf   :  { %p2524_p7 = pnand %p2523_p6, %p2517_p3 }
  0x11   :  { %2527 = shalt.err (!%p2524_p7)
}
  0x12   :  { %s2647_s11 = smov 1024   ;;  %s2648_s12 = smov 64  }
  0x13   :  { %37 = dma.hbm_to_vmem [thread:$0]  %s3032_s1, 4096, %s32_s25, [#allocation6], %s2647_s11, %s2647_s11, %s2648_s12  }
  0x14   :  { %s2649_s15 = smov [#allocation8]   ;;  %s2528_s19 = scalar_lea.hbm %s3034_s3, 65536 }
  0x15   :  { %s53_s16 = sshll.u32 %s2649_s15, 4  ;;  %p2529_p8 = scmp.ne.s32.totalorder %s3034_s3, %s2528_s19  ;;  %s54_s16 = int_to_ptr.vmem [resolvable:$true] %s53_s16 }
  0x16   :  { %p2532_p9 = scmp.lt.u32.totalorder %s2528_s19, %s3034_s3 }
  0x18   :  { %p2534_p10 = pnand %p2532_p9, %p2529_p8 }
  0x1a   :  { %2537 = shalt.err (!%p2534_p10)
}
  0x1b   :  { %s2538_s24 = scalar_lea.vmem %s54_s16, 65536  ;;  %p2543_p12 = scmp.lt.s32.totalorder %s54_s16, %s54_s16 }
  0x1c   :  { %p2539_p11 = scmp.ne.s32.totalorder %s54_s16, %s2538_s24  ;;  %p2544_p13 = scmp.lt.s32.totalorder %s2538_s24, %s2538_s24 }
  0x1e   :  { %p2545_p0 = por %p2544_p13, %p2543_p12 }
  0x20   :  { %p2546_p1 = pnand %p2545_p0, %p2539_p11 }
  0x22   :  { %2549 = shalt.err (!%p2546_p1)
}
  0x23   :  { %s2650_s1 = smov 512   ;;  %s2651_s25 = smov 32  }
  0x24   :  { %59 = dma.hbm_to_vmem [thread:$0]  %s3034_s3, 65536, %s54_s16, [#allocation9], %s2650_s1, %s2650_s1, %s2651_s25  }
  0x25   :  { %s2652_s28 = smov [#allocation2]   ;;  %s2653_s30 = smov [#allocation7]  }
  0x26   :  { %s22_s29 = sshll.u32 %s2652_s28, 4  ;;  %s44_s8 = sshll.u32 %s2653_s30, 4  ;;  %s23_s29 = int_to_ptr.vmem [resolvable:$true] %s22_s29  ;;  %s45_s8 = int_to_ptr.vmem [resolvable:$true] %s44_s8 }
  0x27   :  { %s2550_s11 = scalar_lea.hbm %s3031_s0, 128 }
  0x28   :  { %p2551_p2 = scmp.ne.s32.totalorder %s3031_s0, %s2550_s11  ;;  %p2554_p3 = scmp.lt.u32.totalorder %s2550_s11, %s3031_s0 }
  0x2a   :  { %p2556_p4 = pnand %p2554_p3, %p2551_p2 }
  0x2c   :  { %2559 = shalt.err (!%p2556_p4)
}
  0x2d   :  { %s2560_s3 = scalar_lea.vmem %s23_s29, 128  ;;  %p2565_p6 = scmp.lt.s32.totalorder %s23_s29, %s23_s29 }
  0x2e   :  { %p2561_p5 = scmp.ne.s32.totalorder %s23_s29, %s2560_s3  ;;  %p2566_p7 = scmp.lt.s32.totalorder %s2560_s3, %s2560_s3 }
  0x30   :  { %p2567_p8 = por %p2566_p7, %p2565_p6 }
  0x32   :  { %p2568_p9 = pnand %p2567_p8, %p2561_p5 }
  0x34   :  { %2571 = shalt.err (!%p2568_p9)
}
  0x35   :  { %25 = dma.hbm_to_vmem [thread:$0]  %s3031_s0, 128, %s23_s29, [#allocation3]  }
  0x36   :  { %s2572_s20 = scalar_lea.hbm %s3033_s2, 128 }
  0x37   :  { %p2573_p10 = scmp.ne.s32.totalorder %s3033_s2, %s2572_s20  ;;  %p2576_p11 = scmp.lt.u32.totalorder %s2572_s20, %s3033_s2 }
  0x39   :  { %p2578_p12 = pnand %p2576_p11, %p2573_p10 }
  0x3b   :  { %2581 = shalt.err (!%p2578_p12)
}
  0x3c   :  { %s2582_s1 = scalar_lea.vmem %s45_s8, 128  ;;  %p2587_p0 = scmp.lt.s32.totalorder %s45_s8, %s45_s8 }
  0x3d   :  { %p2583_p13 = scmp.ne.s32.totalorder %s45_s8, %s2582_s1  ;;  %p2588_p1 = scmp.lt.s32.totalorder %s2582_s1, %s2582_s1 }
  0x3f   :  { %p2589_p2 = por %p2588_p1, %p2587_p0 }
  0x41   :  { %p2590_p3 = pnand %p2589_p2, %p2583_p13 }
  0x43   :  { %2593 = shalt.err (!%p2590_p3)
}
  0x44   :  { %47 = dma.hbm_to_vmem [thread:$0]  %s3033_s2, 128, %s45_s8, [#allocation6]  }
  0x45   :  { %s2654_s26 = smov [#allocation10]   ;;  %s2594_s30 = scalar_lea.hbm %s3035_s4, 64 }
  0x46   :  { %s66_s27 = sshll.u32 %s2654_s26, 4  ;;  %p2595_p4 = scmp.ne.s32.totalorder %s3035_s4, %s2594_s30  ;;  %s67_s27 = int_to_ptr.vmem [resolvable:$true] %s66_s27 }
  0x47   :  { %p2598_p5 = scmp.lt.u32.totalorder %s2594_s30, %s3035_s4 }
  0x49   :  { %p2600_p6 = pnand %p2598_p5, %p2595_p4 }
  0x4b   :  { %2603 = shalt.err (!%p2600_p6)
}
  0x4c   :  { %s2604_s13 = scalar_lea.vmem %s67_s27, 64  ;;  %p2609_p8 = scmp.lt.s32.totalorder %s67_s27, %s67_s27 }
  0x4d   :  { %p2605_p7 = scmp.ne.s32.totalorder %s67_s27, %s2604_s13  ;;  %p2610_p9 = scmp.lt.s32.totalorder %s2604_s13, %s2604_s13 }
  0x4f   :  { %p2611_p10 = por %p2610_p9, %p2609_p8 }
  0x51   :  { %p2612_p11 = pnand %p2611_p10, %p2605_p7 }
  0x53   :  { %2615 = shalt.err (!%p2612_p11)
}
  0x54   :  { %69 = dma.hbm_to_vmem [thread:$0]  %s3035_s4, 64, %s67_s27, [#allocation9]  }
  0x55   :  { %2638 = dma.done.wait [#allocation3], 128  }
  0x56   :  { %2639 = vsyncadd [#allocation3], 4294967168 }
  0x57   :  { %2640 = dma.done.wait [#allocation6], 4224  }
  0x58   :  { %2641 = vsyncadd [#allocation6], 4294963072 }
  0x59   :  { %2642 = dma.done.wait [#allocation9], 65600  }
  0x5a   :  { %2643 = vsyncadd [#allocation9], 4294901696  ;;  %v2655_v0 = vmov 0.0   ;;  %v91_v1 = vld [vmem:[#allocation5 + $0x8] sm:$0xff]  ;;  %v90_v3 = vld [vmem:[#allocation5] sm:$0xff]  ;;  %vm164_vm0 = vcmask 261120  }
  0x5b   :  { %232 = vmatprep.mubr.f32.mxu0 %v2655_v0  ;;  %303 = vmatprep.mubr.f32.mxu1 %v2655_v0  ;;  %v99_v2 = vld [vmem:[#allocation5 + $0x48] sm:$0xff]  ;;  %v98_v5 = vld [vmem:[#allocation5 + $0x40] sm:$0xff]  ;;  %v93_v12 = vld [vmem:[#allocation5 + $0x18] sm:$0xff]  ;;  %s2656_s27 = smov [#allocation11]  }
  0x5c   :  { %v1870_v4 = vpack.c.bf16 %v99_v2, %v91_v1  ;;  %v107_v6 = vld [vmem:[#allocation5 + $0x88] sm:$0xff]  ;;  %v1872_v8 = vpack.c.bf16 %v98_v5, %v90_v3  ;;  %v106_v10 = vld [vmem:[#allocation5 + $0x80] sm:$0xff]  ;;  %v101_v13 = vld [vmem:[#allocation5 + $0x58] sm:$0xff]  ;;  %s1784_s28 = sshll.u32 %s2656_s27, 4  ;;  %s1785_s28 = int_to_ptr.vmem [resolvable:$true] %s1784_s28 }
  0x5d   :  { %v115_v7 = vld [vmem:[#allocation5 + $0xc8] sm:$0xff]  ;;  %v114_v11 = vld [vmem:[#allocation5 + $0xc0] sm:$0xff]  ;;  %v92_v14 = vld [vmem:[#allocation5 + $0x10] sm:$0xff]  ;;  %v1878_v16 = vpack.c.bf16 %v101_v13, %v93_v12  ;;  %s2616_s29 = scalar_lea.vmem %s1785_s28, 128  ;;  %p2621_p13 = scmp.lt.s32.totalorder %s1785_s28, %s1785_s28 }
  0x5e   :  { %v1874_v9 = vpack.c.bf16 %v115_v7, %v107_v6  ;;  %1871 = vmatprep.subr.bf16.mxu0 %v1870_v4  ;;  %v1876_v15 = vpack.c.bf16 %v114_v11, %v106_v10  ;;  %v100_v17 = vld [vmem:[#allocation5 + $0x50] sm:$0xff]  ;;  %v109_v18 = vld [vmem:[#allocation5 + $0x98] sm:$0xff]  ;;  %v95_v24 = vld [vmem:[#allocation5 + $0x28] sm:$0xff]  ;;  %p2617_p12 = scmp.ne.s32.totalorder %s1785_s28, %s2616_s29  ;;  %p2622_p0 = scmp.lt.s32.totalorder %s2616_s29, %s2616_s29 }
  0x5f   :  { %1873 = vmatpush1.bf16.msra.mxu0 %v1872_v8  ;;  %v117_v19 = vld [vmem:[#allocation5 + $0xd8] sm:$0xff]  ;;  %v1880_v20 = vpack.c.bf16 %v100_v17, %v92_v14  ;;  %v108_v22 = vld [vmem:[#allocation5 + $0x90] sm:$0xff]  ;;  %1879 = vmatprep.subr.bf16.mxu1 %v1878_v16  ;;  %v103_v26 = vld [vmem:[#allocation5 + $0x68] sm:$0xff] }
  0x60   :  { %1875 = vmatprep.subr.bf16.mxu0 %v1874_v9  ;;  %v1882_v21 = vpack.c.bf16 %v117_v19, %v109_v18  ;;  %v116_v23 = vld [vmem:[#allocation5 + $0xd0] sm:$0xff]  ;;  %v2759_v25 = vld [vmem:[#allocation2] sm:$0xff]  ;;  %v94_v27 = vld [vmem:[#allocation5 + $0x20] sm:$0xff]  ;;  %v1886_v30 = vpack.c.bf16 %v103_v26, %v95_v24  ;;  %p2623_p1 = por %p2622_p0, %p2621_p13 }
  0x61   :  { %v102_v28 = vld [vmem:[#allocation5 + $0x60] sm:$0xff]  ;;  %1881 = vmatpush1.bf16.msra.mxu1 %v1880_v20  ;;  %v1884_v29 = vpack.c.bf16 %v116_v23, %v108_v22  ;;  %v111_v31 = vld [vmem:[#allocation5 + $0xa8] sm:$0xff]  ;;  %v97_v36 = vld [vmem:[#allocation5 + $0x38] sm:$0xff] }
  0x62   :  { %v119_v32 = vld [vmem:[#allocation5 + $0xe8] sm:$0xff]  ;;  %v110_v33 = vld [vmem:[#allocation5 + $0xa0] sm:$0xff]  ;;  %1883 = vmatprep.subr.bf16.mxu1 %v1882_v21  ;;  %v1888_v34 = vpack.c.bf16 %v102_v28, %v94_v27  ;;  %v105_v37 = vld [vmem:[#allocation5 + $0x78] sm:$0xff]  ;;  %p2624_p2 = pnand %p2623_p1, %p2617_p12 }
  0x63   :  { %1877 = vmatpush1.bf16.msra.mxu0 %v1876_v15  ;;  %v118_v35 = vld [vmem:[#allocation5 + $0xe0] sm:$0xff]  ;;  %v1890_v38 = vpack.c.bf16 %v119_v32, %v111_v31  ;;  %v1894_v39 = vpack.c.bf16 %v105_v37, %v97_v36  ;;  %v96_v40 = vld [vmem:[#allocation5 + $0x30] sm:$0xff]  ;;  %v113_v42 = vld [vmem:[#allocation5 + $0xb8] sm:$0xff] }
  0x64   :  { %1887 = vmatprep.subr.bf16.mxu0 %v1886_v30  ;;  %v104_v41 = vld [vmem:[#allocation5 + $0x70] sm:$0xff]  ;;  %v121_v43 = vld [vmem:[#allocation5 + $0xf8] sm:$0xff]  ;;  %v1892_v47 = vpack.c.bf16 %v118_v35, %v110_v33  ;;  %v463_v51 = vld [vmem:[#allocation8 + $0x18] sm:$0xff] }
  0x65   :  { %1885 = vmatpush1.bf16.msra.mxu1 %v1884_v29  ;;  %v1896_v44 = vpack.c.bf16 %v104_v41, %v96_v40  ;;  %v461_v45 = vld [vmem:[#allocation8 + $0x8] sm:$0xff]  ;;  %v1898_v48 = vpack.c.bf16 %v121_v43, %v113_v42  ;;  %v467_v53 = vld [vmem:[#allocation8 + $0x38] sm:$0xff]  ;;  %v460_v54 = vld [vmem:[#allocation8] sm:$0xff] }
  0x66   :  { %1795 = vmatmul.mubr.msk.f32.vlgmr.msra.gmra.mrb[0].mxu0 %vm164_vm0, %v2759_v25  ;;  %v465_v46 = vld [vmem:[#allocation8 + $0x28] sm:$0xff]  ;;  %1895 = vmatprep.subr.bf16.mxu1 %v1894_v39  ;;  %v464_v55 = vld [vmem:[#allocation8 + $0x20] sm:$0xff]  ;;  %v2158_v59 = vpack.c.bf16 %v467_v53, %v463_v51  ;;  %v462_v61 = vld [vmem:[#allocation8 + $0x10] sm:$0xff] }
  0x67   :  { %1889 = vmatpush1.bf16.msra.mxu0 %v1888_v34  ;;  %374 = vmatprep.mubr.f32.mxu0 %v2655_v0  ;;  %v112_v49 = vld [vmem:[#allocation5 + $0xb0] sm:$0xff]  ;;  %v1902_v52 = vpack.c.bf16 %v465_v46, %v461_v45  ;;  %v1904_v60 = vpack.c.bf16 %v464_v55, %v460_v54  ;;  %v466_v62 = vld [vmem:[#allocation8 + $0x30] sm:$0xff]  ;;  %v471_v63 = vld [vmem:[#allocation8 + $0x58] sm:$0xff] }
  0x68   :  { %v120_v50 = vld [vmem:[#allocation5 + $0xf0] sm:$0xff]  ;;  %1891 = vmatprep.subr.bf16.mxu0 %v1890_v38  ;;  %1796 = vmatmul.mubr.msk.f32.vlgmr.msra.gmra.mrb[0].mxu1 %vm164_vm0, %v2759_v25  ;;  %v475_v2 = vld [vmem:[#allocation8 + $0x78] sm:$0xff]  ;;  %v468_v3 = vld [vmem:[#allocation8 + $0x40] sm:$0xff]  ;;  %v2160_v7 = vpack.c.bf16 %v466_v62, %v462_v61 }
  0x69   :  { %v469_v56 = vld [vmem:[#allocation8 + $0x48] sm:$0xff]  ;;  %1897 = vmatpush1.bf16.msra.mxu1 %v1896_v44  ;;  %v1900_v58 = vpack.c.bf16 %v120_v50, %v112_v49  ;;  %445 = vmatprep.mubr.f32.mxu1 %v2655_v0  ;;  %v472_v4 = vld [vmem:[#allocation8 + $0x60] sm:$0xff]  ;;  %v2162_v0 = vpack.c.bf16 %v475_v2, %v471_v63  ;;  %v470_v9 = vld [vmem:[#allocation8 + $0x50] sm:$0xff] }
  0x6a   :  { %v473_v57 = vld [vmem:[#allocation8 + $0x68] sm:$0xff]  ;;  %1899 = vmatprep.subr.bf16.mxu1 %v1898_v48  ;;  %v1908_v8 = vpack.c.bf16 %v472_v4, %v468_v3  ;;  %v474_v10 = vld [vmem:[#allocation8 + $0x70] sm:$0xff]  ;;  %v479_v11 = vld [vmem:[#allocation8 + $0x98] sm:$0xff] }
  0x6b   :  { %1893 = vmatpush1.bf16.msra.mxu0 %v1892_v47  ;;  %v1906_v1 = vpack.c.bf16 %v473_v57, %v469_v56  ;;  %v477_v5 = vld [vmem:[#allocation8 + $0x88] sm:$0xff]  ;;  %v483_v13 = vld [vmem:[#allocation8 + $0xb8] sm:$0xff]  ;;  %v476_v14 = vld [vmem:[#allocation8 + $0x80] sm:$0xff]  ;;  %v2164_v18 = vpack.c.bf16 %v474_v10, %v470_v9 }
  0x6c   :  { %1903 = vmatprep.subr.bf16.mxu0 %v1902_v52  ;;  %v481_v6 = vld [vmem:[#allocation8 + $0xa8] sm:$0xff]  ;;  %v480_v15 = vld [vmem:[#allocation8 + $0xa0] sm:$0xff]  ;;  %v2166_v19 = vpack.c.bf16 %v483_v13, %v479_v11  ;;  %v478_v21 = vld [vmem:[#allocation8 + $0x90] sm:$0xff] }
  0x6d   :  { %1901 = vmatpush1.bf16.msra.mxu1 %v1900_v58  ;;  %v1910_v12 = vpack.c.bf16 %v481_v6, %v477_v5  ;;  %v485_v16 = vld [vmem:[#allocation8 + $0xc8] sm:$0xff]  ;;  %v1912_v20 = vpack.c.bf16 %v480_v15, %v476_v14  ;;  %v482_v22 = vld [vmem:[#allocation8 + $0xb0] sm:$0xff]  ;;  %v487_v23 = vld [vmem:[#allocation8 + $0xd8] sm:$0xff] }
  0x6e   :  { %1797 = vmatmul.mubr.msk.f32.vlgmr.msra.gmra.mrb[2].mxu0 %vm164_vm0, %v2759_v25  ;;  %2159 = vmatprep.subr.bf16.mxu1 %v2158_v59  ;;  %v489_v17 = vld [vmem:[#allocation8 + $0xe8] sm:$0xff]  ;;  %v491_v26 = vld [vmem:[#allocation8 + $0xf8] sm:$0xff]  ;;  %v484_v27 = vld [vmem:[#allocation8 + $0xc0] sm:$0xff] }
  0x6f   :  { %1905 = vmatpush1.bf16.msra.mxu0 %v1904_v60  ;;  %v1914_v24 = vpack.c.bf16 %v489_v17, %v485_v16  ;;  %v488_v28 = vld [vmem:[#allocation8 + $0xe0] sm:$0xff]  ;;  %v493_v29 = vld [vmem:[#allocation8 + $0x108] sm:$0xff]  ;;  %v2170_v31 = vpack.c.bf16 %v491_v26, %v487_v23  ;;  %v486_v33 = vld [vmem:[#allocation8 + $0xd0] sm:$0xff] }
  0x70   :  { %1907 = vmatprep.subr.bf16.mxu0 %v1906_v1  ;;  %1798 = vmatmul.mubr.msk.f32.vlgmr.msra.gmra.mrb[2].mxu1 %vm164_vm0, %v2759_v25  ;;  %v497_v30 = vld [vmem:[#allocation8 + $0x128] sm:$0xff]  ;;  %v2168_v25 = vpack.c.bf16 %v482_v22, %v478_v21  ;;  %v1916_v32 = vpack.c.bf16 %v488_v28, %v484_v27  ;;  %v490_v34 = vld [vmem:[#allocation8 + $0xf0] sm:$0xff]  ;;  %v495_v35 = vld [vmem:[#allocation8 + $0x118] sm:$0xff] }
  0x71   :  { %2161 = vmatpush1.bf16.msra.mxu1 %v2160_v7  ;;  %v1918_v36 = vpack.c.bf16 %v497_v30, %v493_v29  ;;  %v499_v37 = vld [vmem:[#allocation8 + $0x138] sm:$0xff]  ;;  %v492_v38 = vld [vmem:[#allocation8 + $0x100] sm:$0xff]  ;;  %v501_v40 = vld [vmem:[#allocation8 + $0x148] sm:$0xff]  ;;  %v2172_v42 = vpack.c.bf16 %v490_v34, %v486_v33 }
  0x72   :  { %2163 = vmatprep.subr.bf16.mxu1 %v2162_v0  ;;  %v496_v39 = vld [vmem:[#allocation8 + $0x120] sm:$0xff]  ;;  %v505_v41 = vld [vmem:[#allocation8 + $0x168] sm:$0xff]  ;;  %v2174_v43 = vpack.c.bf16 %v499_v37, %v495_v35  ;;  %v494_v45 = vld [vmem:[#allocation8 + $0x110] sm:$0xff] }
  0x73   :  { %1909 = vmatpush1.bf16.msra.mxu0 %v1908_v8  ;;  %v1920_v44 = vpack.c.bf16 %v496_v39, %v492_v38  ;;  %v498_v46 = vld [vmem:[#allocation8 + $0x130] sm:$0xff]  ;;  %v503_v47 = vld [vmem:[#allocation8 + $0x158] sm:$0xff]  ;;  %v1922_v48 = vpack.c.bf16 %v505_v41, %v501_v40  ;;  %v500_v50 = vld [vmem:[#allocation8 + $0x140] sm:$0xff] }
  0x74   :  { %1911 = vmatprep.subr.bf16.mxu0 %v1910_v12  ;;  %v507_v49 = vld [vmem:[#allocation8 + $0x178] sm:$0xff]  ;;  %v504_v51 = vld [vmem:[#allocation8 + $0x160] sm:$0xff]  ;;  %v509_v52 = vld [vmem:[#allocation8 + $0x188] sm:$0xff]  ;;  %v2176_v54 = vpack.c.bf16 %v498_v46, %v494_v45 }
  0x75   :  { %2165 = vmatpush1.bf16.msra.mxu1 %v2164_v18  ;;  %v513_v53 = vld [vmem:[#allocation8 + $0x1a8] sm:$0xff]  ;;  %v2178_v55 = vpack.c.bf16 %v507_v49, %v503_v47  ;;  %v1924_v56 = vpack.c.bf16 %v504_v51, %v500_v50  ;;  %v502_v57 = vld [vmem:[#allocation8 + $0x150] sm:$0xff]  ;;  %v511_v59 = vld [vmem:[#allocation8 + $0x198] sm:$0xff] }
  0x76   :  { %2167 = vmatprep.subr.bf16.mxu1 %v2166_v19  ;;  %v506_v58 = vld [vmem:[#allocation8 + $0x170] sm:$0xff]  ;;  %v1926_v60 = vpack.c.bf16 %v513_v53, %v509_v52  ;;  %v515_v61 = vld [vmem:[#allocation8 + $0x1b8] sm:$0xff]  ;;  %v508_v62 = vld [vmem:[#allocation8 + $0x180] sm:$0xff] }
  0x77   :  { %1913 = vmatpush1.bf16.msra.mxu0 %v1912_v20  ;;  %v512_v63 = vld [vmem:[#allocation8 + $0x1a0] sm:$0xff]  ;;  %v517_v1 = vld [vmem:[#allocation8 + $0x1c8] sm:$0xff]  ;;  %v2180_v3 = vpack.c.bf16 %v506_v58, %v502_v57  ;;  %v2182_v4 = vpack.c.bf16 %v515_v61, %v511_v59  ;;  %v510_v6 = vld [vmem:[#allocation8 + $0x190] sm:$0xff] }
  0x78   :  { %1915 = vmatprep.subr.bf16.mxu0 %v1914_v24  ;;  %v521_v2 = vld [vmem:[#allocation8 + $0x1e8] sm:$0xff]  ;;  %v1928_v5 = vpack.c.bf16 %v512_v63, %v508_v62  ;;  %v514_v7 = vld [vmem:[#allocation8 + $0x1b0] sm:$0xff]  ;;  %v519_v0 = vld [vmem:[#allocation8 + $0x1d8] sm:$0xff] }
  0x79   :  { %2169 = vmatpush1.bf16.msra.mxu1 %v2168_v25  ;;  %v1930_v8 = vpack.c.bf16 %v521_v2, %v517_v1  ;;  %v523_v9 = vld [vmem:[#allocation8 + $0x1f8] sm:$0xff]  ;;  %v516_v10 = vld [vmem:[#allocation8 + $0x1c0] sm:$0xff]  ;;  %v525_v12 = vld [vmem:[#allocation8 + $0x208] sm:$0xff]  ;;  %v2184_v14 = vpack.c.bf16 %v514_v7, %v510_v6 }
  0x7a   :  { %2171 = vmatprep.subr.bf16.mxu1 %v2170_v31  ;;  %v520_v11 = vld [vmem:[#allocation8 + $0x1e0] sm:$0xff]  ;;  %v529_v13 = vld [vmem:[#allocation8 + $0x228] sm:$0xff]  ;;  %v2186_v15 = vpack.c.bf16 %v523_v9, %v519_v0  ;;  %v518_v17 = vld [vmem:[#allocation8 + $0x1d0] sm:$0xff] }
  0x7b   :  { %1917 = vmatpush1.bf16.msra.mxu0 %v1916_v32  ;;  %v1932_v16 = vpack.c.bf16 %v520_v11, %v516_v10  ;;  %v522_v18 = vld [vmem:[#allocation8 + $0x1f0] sm:$0xff]  ;;  %v527_v19 = vld [vmem:[#allocation8 + $0x218] sm:$0xff]  ;;  %v1934_v20 = vpack.c.bf16 %v529_v13, %v525_v12  ;;  %v524_v22 = vld [vmem:[#allocation8 + $0x200] sm:$0xff] }
  0x7c   :  { %1919 = vmatprep.subr.bf16.mxu0 %v1918_v36  ;;  %v531_v21 = vld [vmem:[#allocation8 + $0x238] sm:$0xff]  ;;  %v528_v23 = vld [vmem:[#allocation8 + $0x220] sm:$0xff]  ;;  %v533_v24 = vld [vmem:[#allocation8 + $0x248] sm:$0xff]  ;;  %v2188_v27 = vpack.c.bf16 %v522_v18, %v518_v17 }
  0x7d   :  { %2173 = vmatpush1.bf16.msra.mxu1 %v2172_v42  ;;  %v537_v26 = vld [vmem:[#allocation8 + $0x268] sm:$0xff]  ;;  %v2190_v28 = vpack.c.bf16 %v531_v21, %v527_v19  ;;  %v1936_v29 = vpack.c.bf16 %v528_v23, %v524_v22  ;;  %v526_v30 = vld [vmem:[#allocation8 + $0x210] sm:$0xff]  ;;  %v535_v31 = vld [vmem:[#allocation8 + $0x258] sm:$0xff] }
  0x7e   :  { %2175 = vmatprep.subr.bf16.mxu1 %v2174_v43  ;;  %v530_v25 = vld [vmem:[#allocation8 + $0x230] sm:$0xff]  ;;  %v1938_v32 = vpack.c.bf16 %v537_v26, %v533_v24  ;;  %v539_v33 = vld [vmem:[#allocation8 + $0x278] sm:$0xff]  ;;  %v532_v34 = vld [vmem:[#allocation8 + $0x240] sm:$0xff] }
  0x7f   :  { %1921 = vmatpush1.bf16.msra.mxu0 %v1920_v44  ;;  %v536_v35 = vld [vmem:[#allocation8 + $0x260] sm:$0xff]  ;;  %v541_v36 = vld [vmem:[#allocation8 + $0x288] sm:$0xff]  ;;  %v2192_v38 = vpack.c.bf16 %v530_v25, %v526_v30  ;;  %v2194_v39 = vpack.c.bf16 %v539_v33, %v535_v31  ;;  %v534_v41 = vld [vmem:[#allocation8 + $0x250] sm:$0xff] }
  0x80   :  { %1923 = vmatprep.subr.bf16.mxu0 %v1922_v48  ;;  %v545_v37 = vld [vmem:[#allocation8 + $0x2a8] sm:$0xff]  ;;  %v1940_v40 = vpack.c.bf16 %v536_v35, %v532_v34  ;;  %v538_v42 = vld [vmem:[#allocation8 + $0x270] sm:$0xff]  ;;  %v543_v43 = vld [vmem:[#allocation8 + $0x298] sm:$0xff] }
  0x81   :  { %2177 = vmatpush1.bf16.msra.mxu1 %v2176_v54  ;;  %v1942_v44 = vpack.c.bf16 %v545_v37, %v541_v36  ;;  %v547_v45 = vld [vmem:[#allocation8 + $0x2b8] sm:$0xff]  ;;  %v540_v46 = vld [vmem:[#allocation8 + $0x280] sm:$0xff]  ;;  %v549_v48 = vld [vmem:[#allocation8 + $0x2c8] sm:$0xff]  ;;  %v2196_v50 = vpack.c.bf16 %v538_v42, %v534_v41 }
  0x82   :  { %2179 = vmatprep.subr.bf16.mxu1 %v2178_v55  ;;  %v544_v47 = vld [vmem:[#allocation8 + $0x2a0] sm:$0xff]  ;;  %v553_v49 = vld [vmem:[#allocation8 + $0x2e8] sm:$0xff]  ;;  %v2198_v51 = vpack.c.bf16 %v547_v45, %v543_v43  ;;  %v542_v53 = vld [vmem:[#allocation8 + $0x290] sm:$0xff] }
  0x83   :  { %1925 = vmatpush1.bf16.msra.mxu0 %v1924_v56  ;;  %v1944_v52 = vpack.c.bf16 %v544_v47, %v540_v46  ;;  %v546_v54 = vld [vmem:[#allocation8 + $0x2b0] sm:$0xff]  ;;  %v551_v55 = vld [vmem:[#allocation8 + $0x2d8] sm:$0xff]  ;;  %v1946_v56 = vpack.c.bf16 %v553_v49, %v549_v48  ;;  %v548_v58 = vld [vmem:[#allocation8 + $0x2c0] sm:$0xff] }
  0x84   :  { %1927 = vmatprep.subr.bf16.mxu0 %v1926_v60  ;;  %v555_v57 = vld [vmem:[#allocation8 + $0x2f8] sm:$0xff]  ;;  %v552_v59 = vld [vmem:[#allocation8 + $0x2e0] sm:$0xff]  ;;  %v557_v60 = vld [vmem:[#allocation8 + $0x308] sm:$0xff]  ;;  %v2200_v62 = vpack.c.bf16 %v546_v54, %v542_v53 }
  0x85   :  { %2181 = vmatpush1.bf16.msra.mxu1 %v2180_v3  ;;  %v561_v61 = vld [vmem:[#allocation8 + $0x328] sm:$0xff]  ;;  %v2202_v63 = vpack.c.bf16 %v555_v57, %v551_v55  ;;  %v1948_v1 = vpack.c.bf16 %v552_v59, %v548_v58  ;;  %v550_v2 = vld [vmem:[#allocation8 + $0x2d0] sm:$0xff]  ;;  %v563_v6 = vld [vmem:[#allocation8 + $0x338] sm:$0xff] }
  0x86   :  { %2183 = vmatprep.subr.bf16.mxu1 %v2182_v4  ;;  %v554_v3 = vld [vmem:[#allocation8 + $0x2f0] sm:$0xff]  ;;  %v559_v4 = vld [vmem:[#allocation8 + $0x318] sm:$0xff]  ;;  %v556_v7 = vld [vmem:[#allocation8 + $0x300] sm:$0xff] }
  0x87   :  { %1929 = vmatpush1.bf16.msra.mxu0 %v1928_v5  ;;  %v1950_v5 = vpack.c.bf16 %v561_v61, %v557_v60  ;;  %v560_v0 = vld [vmem:[#allocation8 + $0x320] sm:$0xff]  ;;  %v569_v9 = vld [vmem:[#allocation8 + $0x368] sm:$0xff]  ;;  %v2204_v10 = vpack.c.bf16 %v554_v3, %v550_v2  ;;  %v2206_v11 = vpack.c.bf16 %v563_v6, %v559_v4  ;;  %v558_v13 = vld [vmem:[#allocation8 + $0x310] sm:$0xff] }
  0x88   :  { %1931 = vmatprep.subr.bf16.mxu0 %v1930_v8  ;;  %v565_v8 = vld [vmem:[#allocation8 + $0x348] sm:$0xff]  ;;  %v1952_v12 = vpack.c.bf16 %v560_v0, %v556_v7  ;;  %v571_v17 = vld [vmem:[#allocation8 + $0x378] sm:$0xff]  ;;  %v564_v18 = vld [vmem:[#allocation8 + $0x340] sm:$0xff] }
  0x89   :  { %2185 = vmatpush1.bf16.msra.mxu1 %v2184_v14  ;;  %v562_v14 = vld [vmem:[#allocation8 + $0x330] sm:$0xff]  ;;  %v568_v19 = vld [vmem:[#allocation8 + $0x360] sm:$0xff]  ;;  %v577_v21 = vld [vmem:[#allocation8 + $0x3a8] sm:$0xff] }
  0x8a   :  { %2187 = vmatprep.subr.bf16.mxu1 %v2186_v15  ;;  %v567_v15 = vld [vmem:[#allocation8 + $0x358] sm:$0xff]  ;;  %v2208_v22 = vpack.c.bf16 %v562_v14, %v558_v13  ;;  %v1956_v24 = vpack.c.bf16 %v568_v19, %v564_v18  ;;  %v566_v26 = vld [vmem:[#allocation8 + $0x350] sm:$0xff]  ;;  %v572_v25 = vld [vmem:[#allocation8 + $0x380] sm:$0xff] }
  0x8b   :  { %1933 = vmatpush1.bf16.msra.mxu0 %v1932_v16  ;;  %v1954_v16 = vpack.c.bf16 %v569_v9, %v565_v8  ;;  %v2210_v23 = vpack.c.bf16 %v571_v17, %v567_v15  ;;  %v579_v30 = vld [vmem:[#allocation8 + $0x3b8] sm:$0xff]  ;;  %v576_v31 = vld [vmem:[#allocation8 + $0x3a0] sm:$0xff]  ;;  %v574_v35 = vld [vmem:[#allocation8 + $0x390] sm:$0xff] }
  0x8c   :  { %1935 = vmatprep.subr.bf16.mxu0 %v1934_v20  ;;  %v573_v20 = vld [vmem:[#allocation8 + $0x388] sm:$0xff]  ;;  %v1960_v34 = vpack.c.bf16 %v576_v31, %v572_v25  ;;  %v578_v36 = vld [vmem:[#allocation8 + $0x3b0] sm:$0xff]  ;;  %v587_v42 = vld [vmem:[#allocation8 + $0x3f8] sm:$0xff] }
  0x8d   :  { %2189 = vmatpush1.bf16.msra.mxu1 %v2188_v27  ;;  %v570_v27 = vld [vmem:[#allocation8 + $0x370] sm:$0xff]  ;;  %v2216_v37 = vpack.c.bf16 %v578_v36, %v574_v35  ;;  %v580_v43 = vld [vmem:[#allocation8 + $0x3c0] sm:$0xff]  ;;  %v595_v54 = vld [vmem:[#allocation8 + $0x438] sm:$0xff] }
  0x8e   :  { %2191 = vmatprep.subr.bf16.mxu1 %v2190_v28  ;;  %v575_v28 = vld [vmem:[#allocation8 + $0x398] sm:$0xff]  ;;  %v582_v47 = vld [vmem:[#allocation8 + $0x3d0] sm:$0xff]  ;;  %v588_v2 = vld [vmem:[#allocation8 + $0x400] sm:$0xff] }
  0x8f   :  { %1937 = vmatpush1.bf16.msra.mxu0 %v1936_v29  ;;  %v1958_v29 = vpack.c.bf16 %v577_v21, %v573_v20  ;;  %v2214_v33 = vpack.c.bf16 %v579_v30, %v575_v28  ;;  %v586_v48 = vld [vmem:[#allocation8 + $0x3f0] sm:$0xff]  ;;  %v2774_v59 = vld [vmem:[#allocation7] sm:$0xff]  ;;  %v592_v3 = vld [vmem:[#allocation8 + $0x420] sm:$0xff] }
  0x90   :  { %1939 = vmatprep.subr.bf16.mxu0 %v1938_v32  ;;  %v2212_v32 = vpack.c.bf16 %v570_v27, %v566_v26  ;;  %v2220_v49 = vpack.c.bf16 %v586_v48, %v582_v47  ;;  %v590_v6 = vld [vmem:[#allocation8 + $0x410] sm:$0xff]  ;;  %v597_v0 = vld [vmem:[#allocation8 + $0x448] sm:$0xff]  ;;  %v1968_v15 = vpack.c.bf16 %v592_v3, %v588_v2  ;;  %v596_v17 = vld [vmem:[#allocation8 + $0x440] sm:$0xff] }
  0x91   :  { %2193 = vmatpush1.bf16.msra.mxu1 %v2192_v38  ;;  %v581_v38 = vld [vmem:[#allocation8 + $0x3c8] sm:$0xff]  ;;  %v594_v7 = vld [vmem:[#allocation8 + $0x430] sm:$0xff]  ;;  %v600_v18 = vld [vmem:[#allocation8 + $0x460] sm:$0xff] }
  0x92   :  { %2195 = vmatprep.subr.bf16.mxu1 %v2194_v39  ;;  %v585_v39 = vld [vmem:[#allocation8 + $0x3e8] sm:$0xff]  ;;  %v611_v30 = vld [vmem:[#allocation8 + $0x4b8] sm:$0xff]  ;;  %v1972_v31 = vpack.c.bf16 %v600_v18, %v596_v17  ;;  %v612_v47 = vld [vmem:[#allocation8 + $0x4c0] sm:$0xff] }
  0x93   :  { %1941 = vmatpush1.bf16.msra.mxu0 %v1940_v40  ;;  %v583_v40 = vld [vmem:[#allocation8 + $0x3d8] sm:$0xff]  ;;  %v1962_v41 = vpack.c.bf16 %v585_v39, %v581_v38  ;;  %v605_v26 = vld [vmem:[#allocation8 + $0x488] sm:$0xff]  ;;  %v606_v38 = vld [vmem:[#allocation8 + $0x490] sm:$0xff] }
  0x94   :  { %1943 = vmatprep.subr.bf16.mxu0 %v1942_v44  ;;  %v584_v44 = vld [vmem:[#allocation8 + $0x3e0] sm:$0xff]  ;;  %v2218_v45 = vpack.c.bf16 %v587_v42, %v583_v40  ;;  %v609_v28 = vld [vmem:[#allocation8 + $0x4a8] sm:$0xff]  ;;  %v610_v39 = vld [vmem:[#allocation8 + $0x4b0] sm:$0xff] }
  0x95   :  { %2197 = vmatpush1.bf16.msra.mxu1 %v2196_v50  ;;  %v1964_v46 = vpack.c.bf16 %v584_v44, %v580_v43  ;;  %v589_v50 = vld [vmem:[#allocation8 + $0x408] sm:$0xff]  ;;  %v1974_v36 = vpack.c.bf16 %v609_v28, %v605_v26  ;;  %v615_v43 = vld [vmem:[#allocation8 + $0x4d8] sm:$0xff]  ;;  %v616_v48 = vld [vmem:[#allocation8 + $0x4e0] sm:$0xff] }
  0x96   :  { %2199 = vmatprep.subr.bf16.mxu1 %v2198_v51  ;;  %v593_v51 = vld [vmem:[#allocation8 + $0x428] sm:$0xff]  ;;  %v619_v44 = vld [vmem:[#allocation8 + $0x4f8] sm:$0xff]  ;;  %v624_v2 = vld [vmem:[#allocation8 + $0x520] sm:$0xff] }
  0x97   :  { %1945 = vmatpush1.bf16.msra.mxu0 %v1944_v52  ;;  %v591_v52 = vld [vmem:[#allocation8 + $0x418] sm:$0xff]  ;;  %v1966_v53 = vpack.c.bf16 %v593_v51, %v589_v50  ;;  %v613_v40 = vld [vmem:[#allocation8 + $0x4c8] sm:$0xff]  ;;  %v2234_v50 = vpack.c.bf16 %v619_v44, %v615_v43  ;;  %v614_v51 = vld [vmem:[#allocation8 + $0x4d0] sm:$0xff] }
  0x98   :  { %1947 = vmatprep.subr.bf16.mxu0 %v1946_v56  ;;  %v2222_v55 = vpack.c.bf16 %v595_v54, %v591_v52  ;;  %v124_v56 = vlaneseq  ;;  %v617_v42 = vld [vmem:[#allocation8 + $0x4e8] sm:$0xff]  ;;  %v618_v52 = vld [vmem:[#allocation8 + $0x4f0] sm:$0xff]  ;;  %v636_v26 = vld [vmem:[#allocation8 + $0x580] sm:$0xff] }
  0x99   :  { %2201 = vmatpush1.bf16.msra.mxu1 %v2200_v62  ;;  %v625_v54 = vld [vmem:[#allocation8 + $0x528] sm:$0xff]  ;;  %v630_v17 = vld [vmem:[#allocation8 + $0x550] sm:$0xff] }
  0x9a   :  { %2203 = vmatprep.subr.bf16.mxu1 %v2202_v63  ;;  %v2771_v57 = vshrl.u32 %v124_v56, 7  ;;  %v627_v56 = vld [vmem:[#allocation8 + $0x538] sm:$0xff]  ;;  %v634_v18 = vld [vmem:[#allocation8 + $0x570] sm:$0xff] }
  0x9b   :  { %1949 = vmatpush1.bf16.msra.mxu0 %v1948_v1 }
  0x9c   :  { %1951 = vmatprep.subr.bf16.mxu0 %v1950_v5  ;;  %v126_v58 = vsub.s32 0, %v2771_v57  ;;  %v130_v60 = vsub.s32 1, %v2771_v57  ;;  %v138_v62 = vsub.s32 3, %v2771_v57 }
  0x9d   :  { %2205 = vmatpush1.bf16.msra.mxu1 %v2204_v10  ;;  %v601_v10 = vld [vmem:[#allocation8 + $0x468] sm:$0xff] }
  0x9e   :  { %2207 = vmatprep.subr.bf16.mxu1 %v2206_v11  ;;  %v127_v61 = vrot.slane %v2774_v59, %v126_v58  ;;  %v131_v63 = vrot.slane %v2774_v59, %v130_v60  ;;  %v139_v8 = vrot.slane %v2774_v59, %v138_v62  ;;  %v599_v11 = vld [vmem:[#allocation8 + $0x458] sm:$0xff]  ;;  %v1970_v21 = vpack.c.bf16 %v601_v10, %v597_v0  ;;  %v633_v0 = vld [vmem:[#allocation8 + $0x568] sm:$0xff] }
  0x9f   :  { %1953 = vmatpush1.bf16.msra.mxu0 %v1952_v12  ;;  %v603_v12 = vld [vmem:[#allocation8 + $0x478] sm:$0xff] }
  0xa0   :  { %1955 = vmatprep.subr.bf16.mxu0 %v1954_v16  ;;  %v2224_v16 = vpack.c.bf16 %v594_v7, %v590_v6  ;;  %v626_v6 = vld [vmem:[#allocation8 + $0x530] sm:$0xff]  ;;  %v629_v7 = vld [vmem:[#allocation8 + $0x548] sm:$0xff] }
  0xa1   :  { %2209 = vmatpush1.bf16.msra.mxu1 %v2208_v22  ;;  %v2226_v22 = vpack.c.bf16 %v603_v12, %v599_v11  ;;  %v628_v12 = vld [vmem:[#allocation8 + $0x540] sm:$0xff] }
  0xa2   :  { %2211 = vmatprep.subr.bf16.mxu1 %v2210_v23  ;;  %v598_v23 = vld [vmem:[#allocation8 + $0x450] sm:$0xff] }
  0xa3   :  { %1957 = vmatpush1.bf16.msra.mxu0 %v1956_v24  ;;  %v602_v24 = vld [vmem:[#allocation8 + $0x470] sm:$0xff] }
  0xa4   :  { %1959 = vmatprep.subr.bf16.mxu0 %v1958_v29  ;;  %v607_v29 = vld [vmem:[#allocation8 + $0x498] sm:$0xff] }
  0xa5   :  { %2213 = vmatpush1.bf16.msra.mxu1 %v2212_v32  ;;  %v2228_v32 = vpack.c.bf16 %v602_v24, %v598_v23  ;;  %v2244_v24 = vpack.c.bf16 %v634_v18, %v630_v17 }
  0xa6   :  { %2215 = vmatprep.subr.bf16.mxu1 %v2214_v33  ;;  %v604_v33 = vld [vmem:[#allocation8 + $0x480] sm:$0xff] }
  0xa7   :  { %1961 = vmatpush1.bf16.msra.mxu0 %v1960_v34  ;;  %v608_v34 = vld [vmem:[#allocation8 + $0x4a0] sm:$0xff] }
  0xa8   :  { %1963 = vmatprep.subr.bf16.mxu0 %v1962_v41 }
  0xa9   :  { %2217 = vmatpush1.bf16.msra.mxu1 %v2216_v37  ;;  %v2230_v37 = vpack.c.bf16 %v611_v30, %v607_v29  ;;  %v638_v30 = vld [vmem:[#allocation8 + $0x590] sm:$0xff] }
  0xaa   :  { %2219 = vmatprep.subr.bf16.mxu1 %v2218_v45  ;;  %v1976_v45 = vpack.c.bf16 %v608_v34, %v604_v33  ;;  %v649_v33 = vld [vmem:[#allocation8 + $0x5e8] sm:$0xff]  ;;  %v647_v34 = vld [vmem:[#allocation8 + $0x5d8] sm:$0xff] }
  0xab   :  { %1965 = vmatpush1.bf16.msra.mxu0 %v1964_v46  ;;  %v2232_v46 = vpack.c.bf16 %v610_v39, %v606_v38  ;;  %v644_v39 = vld [vmem:[#allocation8 + $0x5c0] sm:$0xff] }
  0xac   :  { %1967 = vmatprep.subr.bf16.mxu0 %v1966_v53  ;;  %v621_v53 = vld [vmem:[#allocation8 + $0x508] sm:$0xff] }
  0xad   :  { %2221 = vmatpush1.bf16.msra.mxu1 %v2220_v49  ;;  %v1978_v49 = vpack.c.bf16 %v617_v42, %v613_v40  ;;  %v1982_v3 = vpack.c.bf16 %v625_v54, %v621_v53  ;;  %v648_v40 = vld [vmem:[#allocation8 + $0x5e0] sm:$0xff] }
  0xae   :  { %2223 = vmatprep.subr.bf16.mxu1 %v2222_v55  ;;  %v623_v55 = vld [vmem:[#allocation8 + $0x518] sm:$0xff]  ;;  %v652_v53 = vld [vmem:[#allocation8 + $0x600] sm:$0xff] }
  0xaf   :  { %v656_v54 = vld [vmem:[#allocation8 + $0x620] sm:$0xff] }
 0x139   :  { %v234_v1 = vpop.f32.mrb[0].mxu0 }
 0x13a   :  { %v235_v4 = vadd.f32 %v234_v1, %v127_v61  ;;  %v236_v5 = vpop.f32.mrb[1].mxu0  ;;  %v1980_v61 = vpack.c.bf16 %v616_v48, %v612_v47  ;;  %v620_v1 = vld [vmem:[#allocation8 + $0x500] sm:$0xff]  ;;  %v653_v47 = vld [vmem:[#allocation8 + $0x608] sm:$0xff] }
 0x13b   :  { %v237_v9 = vadd.f32 %v236_v5, %v131_v63  ;;  %v2787_v13 = vpop.f32.mrb[0].mxu1  ;;  %v2236_v63 = vpack.c.bf16 %v618_v52, %v614_v51  ;;  %v622_v5 = vld [vmem:[#allocation8 + $0x510] sm:$0xff]  ;;  %v1984_v10 = vpack.c.bf16 %v624_v2, %v620_v1  ;;  %v657_v48 = vld [vmem:[#allocation8 + $0x628] sm:$0xff]  ;;  %v1996_v51 = vpack.c.bf16 %v648_v40, %v644_v39 }
 0x13c   :  { %v307_v19 = vpop.f32.mrb[1].mxu1  ;;  %v452_v20 = vmax.f32 %v235_v4, 0.0  ;;  %v2238_v4 = vpack.c.bf16 %v627_v56, %v623_v55  ;;  %v2240_v11 = vpack.c.bf16 %v626_v6, %v622_v5  ;;  %v1998_v55 = vpack.c.bf16 %v657_v48, %v653_v47  ;;  %v661_v1 = vld [vmem:[#allocation8 + $0x648] sm:$0xff]  ;;  %v684_v47 = vld [vmem:[#allocation8 + $0x700] sm:$0xff] }
 0x13d   :  { %v453_v14 = vmax.f32 %v237_v9, 0.0  ;;  %v308_v27 = vadd.f32 %v307_v19, %v139_v8  ;;  %v631_v8 = vld [vmem:[#allocation8 + $0x558] sm:$0xff]  ;;  %v637_v19 = vld [vmem:[#allocation8 + $0x588] sm:$0xff]  ;;  %v2000_v5 = vpack.c.bf16 %v656_v54, %v652_v53  ;;  %v688_v48 = vld [vmem:[#allocation8 + $0x720] sm:$0xff] }
 0x13e   :  { %v635_v9 = vld [vmem:[#allocation8 + $0x578] sm:$0xff]  ;;  %v665_v2 = vld [vmem:[#allocation8 + $0x668] sm:$0xff] }
 0x13f   :  { %1058 = vmatprep.mubr.f32.mxu0 %v453_v14  ;;  %1342 = vmatprep.mubr.f32.mxu1 %v453_v14  ;;  %v455_v25 = vmax.f32 %v308_v27, 0.0  ;;  %v632_v14 = vld [vmem:[#allocation8 + $0x560] sm:$0xff]  ;;  %v685_v39 = vld [vmem:[#allocation8 + $0x708] sm:$0xff] }
 0x140   :  { %1059 = vmatmul.mubr.f32.vlgmr.msra.gmra.mrb[4].mxu0 %v452_v20  ;;  %1343 = vmatmul.mubr.f32.vlgmr.msra.gmra.mrb[4].mxu1 %v452_v20  ;;  %v641_v20 = vld [vmem:[#allocation8 + $0x5a8] sm:$0xff]  ;;  %v1988_v23 = vpack.c.bf16 %v632_v14, %v628_v12  ;;  %v640_v27 = vld [vmem:[#allocation8 + $0x5a0] sm:$0xff] }
 0x141   :  { %1969 = vmatpush1.bf16.msra.mxu0 %v1968_v15  ;;  %2225 = vmatpush1.bf16.msra.mxu1 %v2224_v16  ;;  %v2789_v35 = vpop.f32.mrb[2].mxu0  ;;  %v1986_v15 = vpack.c.bf16 %v633_v0, %v629_v7  ;;  %v2242_v16 = vpack.c.bf16 %v635_v9, %v631_v8  ;;  %v1990_v28 = vpack.c.bf16 %v641_v20, %v637_v19  ;;  %v660_v7 = vld [vmem:[#allocation8 + $0x640] sm:$0xff]  ;;  %v669_v12 = vld [vmem:[#allocation8 + $0x688] sm:$0xff] }
 0x142   :  { %1971 = vmatprep.subr.bf16.mxu0 %v1970_v21  ;;  %2227 = vmatprep.subr.bf16.mxu1 %v2226_v22  ;;  %v2791_v41 = vpop.f32.mrb[3].mxu0  ;;  %v639_v21 = vld [vmem:[#allocation8 + $0x598] sm:$0xff]  ;;  %v664_v0 = vld [vmem:[#allocation8 + $0x660] sm:$0xff]  ;;  %v2002_v8 = vpack.c.bf16 %v665_v2, %v661_v1  ;;  %v673_v14 = vld [vmem:[#allocation8 + $0x6a8] sm:$0xff] }
 0x143   :  { %1129 = vmatprep.mubr.f32.mxu0 %v455_v25  ;;  %1413 = vmatprep.mubr.f32.mxu1 %v455_v25  ;;  %v643_v22 = vld [vmem:[#allocation8 + $0x5b8] sm:$0xff]  ;;  %v642_v25 = vld [vmem:[#allocation8 + $0x5b0] sm:$0xff]  ;;  %v2004_v17 = vpack.c.bf16 %v664_v0, %v660_v7  ;;  %v668_v19 = vld [vmem:[#allocation8 + $0x680] sm:$0xff] }
 0x144   :  { %v2246_v29 = vpack.c.bf16 %v643_v22, %v639_v21  ;;  %v2248_v38 = vpack.c.bf16 %v642_v25, %v638_v30  ;;  %v672_v20 = vld [vmem:[#allocation8 + $0x6a0] sm:$0xff]  ;;  %v2006_v21 = vpack.c.bf16 %v673_v14, %v669_v12  ;;  %v689_v40 = vld [vmem:[#allocation8 + $0x728] sm:$0xff] }
 0x145   :  { %1973 = vmatpush1.bf16.msra.mxu0 %v1972_v31  ;;  %2229 = vmatpush1.bf16.msra.mxu1 %v2228_v32  ;;  %v645_v31 = vld [vmem:[#allocation8 + $0x5c8] sm:$0xff]  ;;  %v2793_v32 = vpop.f32.mrb[2].mxu1  ;;  %v2008_v30 = vpack.c.bf16 %v672_v20, %v668_v19  ;;  %v692_v1 = vld [vmem:[#allocation8 + $0x740] sm:$0xff]  ;;  %v706_v19 = vld [vmem:[#allocation8 + $0x7b0] sm:$0xff] }
 0x146   :  { %1975 = vmatprep.subr.bf16.mxu0 %v1974_v36  ;;  %2231 = vmatprep.subr.bf16.mxu1 %v2230_v37  ;;  %v651_v36 = vld [vmem:[#allocation8 + $0x5f8] sm:$0xff]  ;;  %v1992_v37 = vpack.c.bf16 %v640_v27, %v636_v26  ;;  %v2795_v42 = vpop.f32.mrb[3].mxu1  ;;  %v1994_v43 = vpack.c.bf16 %v649_v33, %v645_v31  ;;  %v677_v26 = vld [vmem:[#allocation8 + $0x6c8] sm:$0xff]  ;;  %v676_v31 = vld [vmem:[#allocation8 + $0x6c0] sm:$0xff] }
 0x147   :  { %v2250_v44 = vpack.c.bf16 %v651_v36, %v647_v34  ;;  %v681_v27 = vld [vmem:[#allocation8 + $0x6e8] sm:$0xff]  ;;  %v680_v33 = vld [vmem:[#allocation8 + $0x6e0] sm:$0xff] }
 0x148   :  { %v2010_v34 = vpack.c.bf16 %v681_v27, %v677_v26  ;;  %v693_v53 = vld [vmem:[#allocation8 + $0x748] sm:$0xff]  ;;  %v696_v2 = vld [vmem:[#allocation8 + $0x760] sm:$0xff] }
 0x149   :  { %1977 = vmatpush1.bf16.msra.mxu0 %v1976_v45  ;;  %2233 = vmatpush1.bf16.msra.mxu1 %v2232_v46  ;;  %v646_v45 = vld [vmem:[#allocation8 + $0x5d0] sm:$0xff]  ;;  %v697_v54 = vld [vmem:[#allocation8 + $0x768] sm:$0xff]  ;;  %v700_v14 = vld [vmem:[#allocation8 + $0x780] sm:$0xff] }
 0x14a   :  { %1979 = vmatprep.subr.bf16.mxu0 %v1978_v49  ;;  %2235 = vmatprep.subr.bf16.mxu1 %v2234_v50  ;;  %v650_v46 = vld [vmem:[#allocation8 + $0x5f0] sm:$0xff]  ;;  %v655_v49 = vld [vmem:[#allocation8 + $0x618] sm:$0xff]  ;;  %v701_v7 = vld [vmem:[#allocation8 + $0x788] sm:$0xff] }
 0x14b   :  { %v659_v50 = vld [vmem:[#allocation8 + $0x638] sm:$0xff]  ;;  %v2252_v52 = vpack.c.bf16 %v650_v46, %v646_v45  ;;  %v2012_v45 = vpack.c.bf16 %v680_v33, %v676_v31  ;;  %v705_v0 = vld [vmem:[#allocation8 + $0x7a8] sm:$0xff]  ;;  %v710_v33 = vld [vmem:[#allocation8 + $0x7d0] sm:$0xff] }
 0x14c   :  { %v2254_v56 = vpack.c.bf16 %v659_v50, %v655_v49  ;;  %v2014_v49 = vpack.c.bf16 %v689_v40, %v685_v39  ;;  %v709_v20 = vld [vmem:[#allocation8 + $0x7c8] sm:$0xff]  ;;  %v723_v39 = vld [vmem:[#allocation8 + $0x838] sm:$0xff] }
 0x14d   :  { %1981 = vmatpush1.bf16.msra.mxu0 %v1980_v61  ;;  %2237 = vmatpush1.bf16.msra.mxu1 %v2236_v63  ;;  %v654_v61 = vld [vmem:[#allocation8 + $0x610] sm:$0xff] }
 0x14e   :  { %1983 = vmatprep.subr.bf16.mxu0 %v1982_v3  ;;  %2239 = vmatprep.subr.bf16.mxu1 %v2238_v4  ;;  %v658_v63 = vld [vmem:[#allocation8 + $0x630] sm:$0xff]  ;;  %v663_v3 = vld [vmem:[#allocation8 + $0x658] sm:$0xff] }
 0x14f   :  { %v667_v4 = vld [vmem:[#allocation8 + $0x678] sm:$0xff]  ;;  %v2256_v6 = vpack.c.bf16 %v658_v63, %v654_v61  ;;  %v2016_v61 = vpack.c.bf16 %v688_v48, %v684_v47  ;;  %v720_v47 = vld [vmem:[#allocation8 + $0x820] sm:$0xff] }
 0x150   :  { %v2258_v9 = vpack.c.bf16 %v667_v4, %v663_v3  ;;  %v2018_v3 = vpack.c.bf16 %v697_v54, %v693_v53  ;;  %v729_v53 = vld [vmem:[#allocation8 + $0x868] sm:$0xff]  ;;  %v727_v54 = vld [vmem:[#allocation8 + $0x858] sm:$0xff] }
 0x151   :  { %1985 = vmatpush1.bf16.msra.mxu0 %v1984_v10  ;;  %2241 = vmatpush1.bf16.msra.mxu1 %v2240_v11  ;;  %v662_v10 = vld [vmem:[#allocation8 + $0x650] sm:$0xff] }
 0x152   :  { %1987 = vmatprep.subr.bf16.mxu0 %v1986_v15  ;;  %2243 = vmatprep.subr.bf16.mxu1 %v2242_v16  ;;  %v666_v11 = vld [vmem:[#allocation8 + $0x670] sm:$0xff]  ;;  %v671_v15 = vld [vmem:[#allocation8 + $0x698] sm:$0xff] }
 0x153   :  { %v675_v16 = vld [vmem:[#allocation8 + $0x6b8] sm:$0xff]  ;;  %v2260_v18 = vpack.c.bf16 %v666_v11, %v662_v10  ;;  %v134_v10 = vsub.s32 2, %v2771_v57  ;;  %v2020_v11 = vpack.c.bf16 %v696_v2, %v692_v1  ;;  %v728_v1 = vld [vmem:[#allocation8 + $0x860] sm:$0xff] }
 0x154   :  { %v2262_v22 = vpack.c.bf16 %v675_v16, %v671_v15  ;;  %v704_v15 = vld [vmem:[#allocation8 + $0x7a0] sm:$0xff]  ;;  %v2022_v16 = vpack.c.bf16 %v705_v0, %v701_v7  ;;  %v737_v7 = vld [vmem:[#allocation8 + $0x8a8] sm:$0xff]  ;;  %v735_v0 = vld [vmem:[#allocation8 + $0x898] sm:$0xff] }
 0x155   :  { %1989 = vmatpush1.bf16.msra.mxu0 %v1988_v23  ;;  %2245 = vmatpush1.bf16.msra.mxu1 %v2244_v24  ;;  %v670_v23 = vld [vmem:[#allocation8 + $0x690] sm:$0xff]  ;;  %v135_v26 = vrot.slane %v2774_v59, %v134_v10  ;;  %v2024_v27 = vpack.c.bf16 %v704_v15, %v700_v14  ;;  %v736_v14 = vld [vmem:[#allocation8 + $0x8a0] sm:$0xff] }
 0x156   :  { %1991 = vmatprep.subr.bf16.mxu0 %v1990_v28  ;;  %2247 = vmatprep.subr.bf16.mxu1 %v2246_v29  ;;  %v674_v24 = vld [vmem:[#allocation8 + $0x6b0] sm:$0xff]  ;;  %v679_v28 = vld [vmem:[#allocation8 + $0x6d8] sm:$0xff] }
 0x157   :  { %v683_v29 = vld [vmem:[#allocation8 + $0x6f8] sm:$0xff]  ;;  %v2264_v25 = vpack.c.bf16 %v674_v24, %v670_v23  ;;  %v146_v24 = vsub.s32 5, %v2771_v57 }
 0x158   :  { %v2266_v36 = vpack.c.bf16 %v683_v29, %v679_v28  ;;  %v715_v23 = vld [vmem:[#allocation8 + $0x7f8] sm:$0xff]  ;;  %v708_v29 = vld [vmem:[#allocation8 + $0x7c0] sm:$0xff] }
 0x159   :  { %1993 = vmatpush1.bf16.msra.mxu0 %v1992_v37  ;;  %2249 = vmatpush1.bf16.msra.mxu1 %v2248_v38  ;;  %v678_v37 = vld [vmem:[#allocation8 + $0x6d0] sm:$0xff]  ;;  %v147_v40 = vrot.slane %v2774_v59, %v146_v24 }
 0x15a   :  { %1995 = vmatprep.subr.bf16.mxu0 %v1994_v43  ;;  %2251 = vmatprep.subr.bf16.mxu1 %v2250_v44  ;;  %v682_v38 = vld [vmem:[#allocation8 + $0x6f0] sm:$0xff]  ;;  %v687_v43 = vld [vmem:[#allocation8 + $0x718] sm:$0xff] }
 0x15b   :  { %v691_v44 = vld [vmem:[#allocation8 + $0x738] sm:$0xff]  ;;  %v2268_v46 = vpack.c.bf16 %v682_v38, %v678_v37  ;;  %v721_v37 = vld [vmem:[#allocation8 + $0x828] sm:$0xff]  ;;  %v379_v59 = vadd.f32 %v2791_v41, %v147_v40  ;;  %v752_v40 = vld [vmem:[#allocation8 + $0x920] sm:$0xff] }
 0x15c   :  { %v2270_v50 = vpack.c.bf16 %v691_v44, %v687_v43  ;;  %v719_v38 = vld [vmem:[#allocation8 + $0x818] sm:$0xff]  ;;  %v306_v43 = vadd.f32 %v2787_v13, %v135_v26  ;;  %v740_v26 = vld [vmem:[#allocation8 + $0x8c0] sm:$0xff] }
 0x15d   :  { %1997 = vmatpush1.bf16.msra.mxu0 %v1996_v51  ;;  %2253 = vmatpush1.bf16.msra.mxu1 %v2252_v52  ;;  %v686_v51 = vld [vmem:[#allocation8 + $0x710] sm:$0xff] }
 0x15e   :  { %1999 = vmatprep.subr.bf16.mxu0 %v1998_v55  ;;  %2255 = vmatprep.subr.bf16.mxu1 %v2254_v56  ;;  %v690_v52 = vld [vmem:[#allocation8 + $0x730] sm:$0xff]  ;;  %v695_v55 = vld [vmem:[#allocation8 + $0x758] sm:$0xff] }
 0x15f   :  { %v699_v56 = vld [vmem:[#allocation8 + $0x778] sm:$0xff]  ;;  %v2272_v63 = vpack.c.bf16 %v690_v52, %v686_v51  ;;  %v722_v51 = vld [vmem:[#allocation8 + $0x830] sm:$0xff]  ;;  %v725_v52 = vld [vmem:[#allocation8 + $0x848] sm:$0xff] }
 0x160   :  { %v2274_v4 = vpack.c.bf16 %v699_v56, %v695_v55  ;;  %v731_v55 = vld [vmem:[#allocation8 + $0x878] sm:$0xff]  ;;  %v454_v56 = vmax.f32 %v306_v43, 0.0  ;;  %v2034_v2 = vpack.c.bf16 %v729_v53, %v725_v52  ;;  %v756_v53 = vld [vmem:[#allocation8 + $0x940] sm:$0xff] }
 0x161   :  { %2001 = vmatpush1.bf16.msra.mxu0 %v2000_v5  ;;  %2257 = vmatpush1.bf16.msra.mxu1 %v2256_v6  ;;  %v694_v5 = vld [vmem:[#allocation8 + $0x750] sm:$0xff] }
 0x162   :  { %2003 = vmatprep.subr.bf16.mxu0 %v2002_v8  ;;  %2259 = vmatprep.subr.bf16.mxu1 %v2258_v9  ;;  %v698_v6 = vld [vmem:[#allocation8 + $0x770] sm:$0xff]  ;;  %v703_v8 = vld [vmem:[#allocation8 + $0x798] sm:$0xff] }
 0x163   :  { %v707_v9 = vld [vmem:[#allocation8 + $0x7b8] sm:$0xff]  ;;  %v2276_v12 = vpack.c.bf16 %v698_v6, %v694_v5  ;;  %v730_v5 = vld [vmem:[#allocation8 + $0x870] sm:$0xff]  ;;  %v733_v6 = vld [vmem:[#allocation8 + $0x888] sm:$0xff] }
 0x164   :  { %v2038_v15 = vpack.c.bf16 %v737_v7, %v733_v6  ;;  %v768_v6 = vld [vmem:[#allocation8 + $0x9a0] sm:$0xff] }
 0x165   :  { %2005 = vmatpush1.bf16.msra.mxu0 %v2004_v17  ;;  %2261 = vmatpush1.bf16.msra.mxu1 %v2260_v18  ;;  %v2278_v17 = vpack.c.bf16 %v707_v9, %v703_v8  ;;  %v702_v18 = vld [vmem:[#allocation8 + $0x790] sm:$0xff]  ;;  %v739_v8 = vld [vmem:[#allocation8 + $0x8b8] sm:$0xff]  ;;  %v457_v9 = vmax.f32 %v379_v59, 0.0 }
 0x166   :  { %2007 = vmatprep.subr.bf16.mxu0 %v2006_v21  ;;  %2263 = vmatprep.subr.bf16.mxu1 %v2262_v22  ;;  %v713_v21 = vld [vmem:[#allocation8 + $0x7e8] sm:$0xff]  ;;  %v711_v22 = vld [vmem:[#allocation8 + $0x7d8] sm:$0xff]  ;;  %v2280_v28 = vpack.c.bf16 %v706_v19, %v702_v18  ;;  %v738_v18 = vld [vmem:[#allocation8 + $0x8b0] sm:$0xff] }
 0x167   :  { %v2282_v31 = vpack.c.bf16 %v715_v23, %v711_v22  ;;  %v741_v19 = vld [vmem:[#allocation8 + $0x8c8] sm:$0xff]  ;;  %v747_v22 = vld [vmem:[#allocation8 + $0x8f8] sm:$0xff] }
 0x169   :  { %2009 = vmatpush1.bf16.msra.mxu0 %v2008_v30  ;;  %2265 = vmatpush1.bf16.msra.mxu1 %v2264_v25  ;;  %v712_v30 = vld [vmem:[#allocation8 + $0x7e0] sm:$0xff]  ;;  %v2026_v25 = vpack.c.bf16 %v713_v21, %v709_v20  ;;  %v745_v20 = vld [vmem:[#allocation8 + $0x8e8] sm:$0xff]  ;;  %v743_v21 = vld [vmem:[#allocation8 + $0x8d8] sm:$0xff] }
 0x16a   :  { %2011 = vmatprep.subr.bf16.mxu0 %v2010_v34  ;;  %2267 = vmatprep.subr.bf16.mxu1 %v2266_v36  ;;  %v714_v34 = vld [vmem:[#allocation8 + $0x7f0] sm:$0xff]  ;;  %v717_v36 = vld [vmem:[#allocation8 + $0x808] sm:$0xff]  ;;  %v2028_v44 = vpack.c.bf16 %v712_v30, %v708_v29  ;;  %v2298_v29 = vpack.c.bf16 %v747_v22, %v743_v21 }
 0x16b   :  { %v2030_v48 = vpack.c.bf16 %v721_v37, %v717_v36  ;;  %v742_v30 = vld [vmem:[#allocation8 + $0x8d0] sm:$0xff]  ;;  %v755_v36 = vld [vmem:[#allocation8 + $0x938] sm:$0xff] }
 0x16c   :  { %v774_v21 = vld [vmem:[#allocation8 + $0x9d0] sm:$0xff] }
 0x16d   :  { %2013 = vmatpush1.bf16.msra.mxu0 %v2012_v45  ;;  %2269 = vmatpush1.bf16.msra.mxu1 %v2268_v46  ;;  %v2284_v45 = vpack.c.bf16 %v714_v34, %v710_v33  ;;  %v716_v46 = vld [vmem:[#allocation8 + $0x800] sm:$0xff]  ;;  %v753_v33 = vld [vmem:[#allocation8 + $0x928] sm:$0xff]  ;;  %v751_v34 = vld [vmem:[#allocation8 + $0x918] sm:$0xff] }
 0x16e   :  { %2015 = vmatprep.subr.bf16.mxu0 %v2014_v49  ;;  %2271 = vmatprep.subr.bf16.mxu1 %v2270_v50  ;;  %v2286_v49 = vpack.c.bf16 %v723_v39, %v719_v38  ;;  %v718_v50 = vld [vmem:[#allocation8 + $0x810] sm:$0xff]  ;;  %v2032_v13 = vpack.c.bf16 %v720_v47, %v716_v46  ;;  %v748_v39 = vld [vmem:[#allocation8 + $0x900] sm:$0xff]  ;;  %v757_v47 = vld [vmem:[#allocation8 + $0x948] sm:$0xff] }
 0x16f   :  { %v754_v46 = vld [vmem:[#allocation8 + $0x930] sm:$0xff] }
 0x170   :  { %v778_v22 = vld [vmem:[#allocation8 + $0x9f0] sm:$0xff] }
 0x171   :  { %2017 = vmatpush1.bf16.msra.mxu0 %v2016_v61  ;;  %2273 = vmatpush1.bf16.msra.mxu1 %v2272_v63  ;;  %v2288_v61 = vpack.c.bf16 %v722_v51, %v718_v50  ;;  %v724_v63 = vld [vmem:[#allocation8 + $0x840] sm:$0xff]  ;;  %v763_v50 = vld [vmem:[#allocation8 + $0x978] sm:$0xff]  ;;  %v2048_v51 = vpack.c.bf16 %v752_v40, %v748_v39 }
 0x172   :  { %2019 = vmatprep.subr.bf16.mxu0 %v2018_v3  ;;  %2275 = vmatprep.subr.bf16.mxu1 %v2274_v4  ;;  %v2290_v3 = vpack.c.bf16 %v731_v55, %v727_v54  ;;  %v726_v4 = vld [vmem:[#allocation8 + $0x850] sm:$0xff]  ;;  %v2036_v41 = vpack.c.bf16 %v728_v1, %v724_v63  ;;  %v760_v54 = vld [vmem:[#allocation8 + $0x960] sm:$0xff]  ;;  %v769_v63 = vld [vmem:[#allocation8 + $0x9a8] sm:$0xff] }
 0x173   :  { %v767_v1 = vld [vmem:[#allocation8 + $0x998] sm:$0xff] }
 0x174   :  { %v791_v39 = vld [vmem:[#allocation8 + $0xa58] sm:$0xff] }
 0x175   :  { %2021 = vmatpush1.bf16.msra.mxu0 %v2020_v11  ;;  %2277 = vmatpush1.bf16.msra.mxu1 %v2276_v12  ;;  %v2292_v11 = vpack.c.bf16 %v730_v5, %v726_v4  ;;  %v732_v12 = vld [vmem:[#allocation8 + $0x880] sm:$0xff]  ;;  %v795_v40 = vld [vmem:[#allocation8 + $0xa78] sm:$0xff] }
 0x176   :  { %2023 = vmatprep.subr.bf16.mxu0 %v2022_v16  ;;  %2279 = vmatprep.subr.bf16.mxu1 %v2278_v17  ;;  %v2294_v16 = vpack.c.bf16 %v739_v8, %v735_v0  ;;  %v734_v17 = vld [vmem:[#allocation8 + $0x890] sm:$0xff]  ;;  %v2040_v23 = vpack.c.bf16 %v736_v14, %v732_v12  ;;  %v764_v5 = vld [vmem:[#allocation8 + $0x980] sm:$0xff]  ;;  %v775_v12 = vld [vmem:[#allocation8 + $0x9d8] sm:$0xff] }
 0x177   :  { %v2296_v24 = vpack.c.bf16 %v738_v18, %v734_v17  ;;  %v766_v8 = vld [vmem:[#allocation8 + $0x990] sm:$0xff]  ;;  %v779_v14 = vld [vmem:[#allocation8 + $0x9f8] sm:$0xff]  ;;  %v772_v17 = vld [vmem:[#allocation8 + $0x9c0] sm:$0xff] }
 0x178   :  { %v776_v18 = vld [vmem:[#allocation8 + $0x9e0] sm:$0xff] }
 0x179   :  { %2025 = vmatpush1.bf16.msra.mxu0 %v2024_v27  ;;  %2281 = vmatpush1.bf16.msra.mxu1 %v2280_v28  ;;  %v744_v27 = vld [vmem:[#allocation8 + $0x8e0] sm:$0xff]  ;;  %v2042_v28 = vpack.c.bf16 %v745_v20, %v741_v19  ;;  %v2314_v20 = vpack.c.bf16 %v779_v14, %v775_v12  ;;  %v806_v12 = vld [vmem:[#allocation8 + $0xad0] sm:$0xff] }
 0x17a   :  { %2027 = vmatprep.subr.bf16.mxu0 %v2026_v25  ;;  %2283 = vmatprep.subr.bf16.mxu1 %v2282_v31  ;;  %v746_v25 = vld [vmem:[#allocation8 + $0x8f0] sm:$0xff]  ;;  %v749_v31 = vld [vmem:[#allocation8 + $0x908] sm:$0xff]  ;;  %v2044_v37 = vpack.c.bf16 %v744_v27, %v740_v26  ;;  %v783_v26 = vld [vmem:[#allocation8 + $0xa18] sm:$0xff] }
 0x17b   :  { %v2300_v38 = vpack.c.bf16 %v746_v25, %v742_v30  ;;  %v2046_v43 = vpack.c.bf16 %v753_v33, %v749_v31  ;;  %v787_v27 = vld [vmem:[#allocation8 + $0xa38] sm:$0xff]  ;;  %v780_v30 = vld [vmem:[#allocation8 + $0xa00] sm:$0xff]  ;;  %v810_v14 = vld [vmem:[#allocation8 + $0xaf0] sm:$0xff] }
 0x17c   :  { %v784_v25 = vld [vmem:[#allocation8 + $0xa20] sm:$0xff]  ;;  %v2318_v33 = vpack.c.bf16 %v787_v27, %v783_v26  ;;  %v814_v26 = vld [vmem:[#allocation8 + $0xb10] sm:$0xff] }
 0x17d   :  { %2029 = vmatpush1.bf16.msra.mxu0 %v2028_v44  ;;  %2285 = vmatpush1.bf16.msra.mxu1 %v2284_v45  ;;  %v2302_v44 = vpack.c.bf16 %v755_v36, %v751_v34  ;;  %v750_v45 = vld [vmem:[#allocation8 + $0x910] sm:$0xff] }
 0x17e   :  { %2031 = vmatprep.subr.bf16.mxu0 %v2030_v48  ;;  %2287 = vmatprep.subr.bf16.mxu1 %v2286_v49  ;;  %v761_v48 = vld [vmem:[#allocation8 + $0x968] sm:$0xff]  ;;  %v759_v49 = vld [vmem:[#allocation8 + $0x958] sm:$0xff]  ;;  %v2304_v52 = vpack.c.bf16 %v754_v46, %v750_v45  ;;  %v782_v34 = vld [vmem:[#allocation8 + $0xa10] sm:$0xff] }
 0x17f   :  { %v2050_v55 = vpack.c.bf16 %v761_v48, %v757_v47  ;;  %v2306_v59 = vpack.c.bf16 %v763_v50, %v759_v49  ;;  %v786_v36 = vld [vmem:[#allocation8 + $0xa30] sm:$0xff]  ;;  %v788_v45 = vld [vmem:[#allocation8 + $0xa40] sm:$0xff]  ;;  %v2322_v48 = vpack.c.bf16 %v795_v40, %v791_v39 }
 0x180   :  { %1130 = vmatmul.mubr.f32.vlgmr.msra.gmra.mrb[4].mxu0 %v454_v56  ;;  %1414 = vmatmul.mubr.f32.vlgmr.msra.gmra.mrb[4].mxu1 %v454_v56  ;;  %v758_v56 = vld [vmem:[#allocation8 + $0x950] sm:$0xff]  ;;  %v792_v46 = vld [vmem:[#allocation8 + $0xa60] sm:$0xff] }
 0x181   :  { %2033 = vmatpush1.bf16.msra.mxu0 %v2032_v13  ;;  %2289 = vmatpush1.bf16.msra.mxu1 %v2288_v61  ;;  %v762_v13 = vld [vmem:[#allocation8 + $0x970] sm:$0xff]  ;;  %v765_v61 = vld [vmem:[#allocation8 + $0x988] sm:$0xff] }
 0x182   :  { %2035 = vmatprep.subr.bf16.mxu0 %v2034_v2  ;;  %2291 = vmatprep.subr.bf16.mxu1 %v2290_v3  ;;  %v771_v2 = vld [vmem:[#allocation8 + $0x9b8] sm:$0xff]  ;;  %v2052_v3 = vpack.c.bf16 %v760_v54, %v756_v53  ;;  %v2308_v4 = vpack.c.bf16 %v762_v13, %v758_v56  ;;  %v2054_v7 = vpack.c.bf16 %v769_v63, %v765_v61  ;;  %v790_v49 = vld [vmem:[#allocation8 + $0xa50] sm:$0xff]  ;;  %v796_v56 = vld [vmem:[#allocation8 + $0xa80] sm:$0xff] }
 0x183   :  { %1200 = vmatprep.mubr.f32.mxu0 %v457_v9  ;;  %1484 = vmatprep.mubr.f32.mxu1 %v457_v9  ;;  %v2310_v0 = vpack.c.bf16 %v771_v2, %v767_v1  ;;  %v770_v9 = vld [vmem:[#allocation8 + $0x9b0] sm:$0xff]  ;;  %v799_v53 = vld [vmem:[#allocation8 + $0xa98] sm:$0xff]  ;;  %v800_v13 = vld [vmem:[#allocation8 + $0xaa0] sm:$0xff] }
 0x184   :  { %v794_v50 = vld [vmem:[#allocation8 + $0xa70] sm:$0xff]  ;;  %v803_v54 = vld [vmem:[#allocation8 + $0xab8] sm:$0xff] }
 0x185   :  { %2037 = vmatpush1.bf16.msra.mxu0 %v2036_v41  ;;  %2293 = vmatpush1.bf16.msra.mxu1 %v2292_v11  ;;  %v773_v41 = vld [vmem:[#allocation8 + $0x9c8] sm:$0xff]  ;;  %v2326_v63 = vpack.c.bf16 %v803_v54, %v799_v53  ;;  %v798_v1 = vld [vmem:[#allocation8 + $0xa90] sm:$0xff] }
 0x186   :  { %2039 = vmatprep.subr.bf16.mxu0 %v2038_v15  ;;  %2295 = vmatprep.subr.bf16.mxu1 %v2294_v16  ;;  %v777_v11 = vld [vmem:[#allocation8 + $0x9e8] sm:$0xff]  ;;  %v2056_v15 = vpack.c.bf16 %v768_v6, %v764_v5  ;;  %v2312_v16 = vpack.c.bf16 %v770_v9, %v766_v8  ;;  %v802_v2 = vld [vmem:[#allocation8 + $0xab0] sm:$0xff]  ;;  %v807_v5 = vld [vmem:[#allocation8 + $0xad8] sm:$0xff] }
 0x187   :  { %v2058_v19 = vpack.c.bf16 %v777_v11, %v773_v41  ;;  %v811_v6 = vld [vmem:[#allocation8 + $0xaf8] sm:$0xff]  ;;  %v804_v8 = vld [vmem:[#allocation8 + $0xac0] sm:$0xff]  ;;  %v818_v27 = vld [vmem:[#allocation8 + $0xb30] sm:$0xff] }
 0x188   :  { %v808_v9 = vld [vmem:[#allocation8 + $0xae0] sm:$0xff]  ;;  %v2330_v11 = vpack.c.bf16 %v811_v6, %v807_v5  ;;  %v822_v39 = vld [vmem:[#allocation8 + $0xb50] sm:$0xff] }
 0x189   :  { %2041 = vmatpush1.bf16.msra.mxu0 %v2040_v23  ;;  %2297 = vmatpush1.bf16.msra.mxu1 %v2296_v24  ;;  %v781_v23 = vld [vmem:[#allocation8 + $0xa08] sm:$0xff]  ;;  %v826_v40 = vld [vmem:[#allocation8 + $0xb70] sm:$0xff]  ;;  %v836_v5 = vld [vmem:[#allocation8 + $0xbc0] sm:$0xff] }
 0x18a   :  { %2043 = vmatprep.subr.bf16.mxu0 %v2042_v28  ;;  %2299 = vmatprep.subr.bf16.mxu1 %v2298_v29  ;;  %v785_v24 = vld [vmem:[#allocation8 + $0xa28] sm:$0xff]  ;;  %v2060_v28 = vpack.c.bf16 %v776_v18, %v772_v17  ;;  %v2316_v29 = vpack.c.bf16 %v778_v22, %v774_v21  ;;  %v815_v17 = vld [vmem:[#allocation8 + $0xb18] sm:$0xff]  ;;  %v812_v21 = vld [vmem:[#allocation8 + $0xb00] sm:$0xff] }
 0x18b   :  { %v2062_v31 = vpack.c.bf16 %v785_v24, %v781_v23  ;;  %v819_v18 = vld [vmem:[#allocation8 + $0xb38] sm:$0xff]  ;;  %v816_v22 = vld [vmem:[#allocation8 + $0xb20] sm:$0xff]  ;;  %v830_v54 = vld [vmem:[#allocation8 + $0xb90] sm:$0xff] }
 0x18c   :  { %v2334_v24 = vpack.c.bf16 %v819_v18, %v815_v17  ;;  %v840_v6 = vld [vmem:[#allocation8 + $0xbe0] sm:$0xff] }
 0x18d   :  { %2045 = vmatpush1.bf16.msra.mxu0 %v2044_v37  ;;  %2301 = vmatpush1.bf16.msra.mxu1 %v2300_v38  ;;  %v789_v37 = vld [vmem:[#allocation8 + $0xa48] sm:$0xff]  ;;  %v2092_v17 = vpack.c.bf16 %v840_v6, %v836_v5  ;;  %v870_v5 = vld [vmem:[#allocation8 + $0xcd0] sm:$0xff] }
 0x18e   :  { %2047 = vmatprep.subr.bf16.mxu0 %v2046_v43  ;;  %2303 = vmatprep.subr.bf16.mxu1 %v2302_v44  ;;  %v793_v38 = vld [vmem:[#allocation8 + $0xa68] sm:$0xff]  ;;  %v2064_v43 = vpack.c.bf16 %v784_v25, %v780_v30  ;;  %v2320_v44 = vpack.c.bf16 %v786_v36, %v782_v34  ;;  %v823_v30 = vld [vmem:[#allocation8 + $0xb58] sm:$0xff]  ;;  %v820_v34 = vld [vmem:[#allocation8 + $0xb40] sm:$0xff] }
 0x18f   :  { %v2066_v47 = vpack.c.bf16 %v793_v38, %v789_v37  ;;  %v827_v25 = vld [vmem:[#allocation8 + $0xb78] sm:$0xff]  ;;  %v824_v36 = vld [vmem:[#allocation8 + $0xb60] sm:$0xff]  ;;  %v874_v6 = vld [vmem:[#allocation8 + $0xcf0] sm:$0xff] }
 0x190   :  { %v2338_v38 = vpack.c.bf16 %v827_v25, %v823_v30 }
 0x191   :  { %2049 = vmatpush1.bf16.msra.mxu0 %v2048_v51  ;;  %2305 = vmatpush1.bf16.msra.mxu1 %v2304_v52  ;;  %v797_v51 = vld [vmem:[#allocation8 + $0xa88] sm:$0xff] }
 0x192   :  { %2051 = vmatprep.subr.bf16.mxu0 %v2050_v55  ;;  %2307 = vmatprep.subr.bf16.mxu1 %v2306_v59  ;;  %v801_v52 = vld [vmem:[#allocation8 + $0xaa8] sm:$0xff]  ;;  %v2068_v55 = vpack.c.bf16 %v792_v46, %v788_v45  ;;  %v2324_v59 = vpack.c.bf16 %v794_v50, %v790_v49  ;;  %v831_v45 = vld [vmem:[#allocation8 + $0xb98] sm:$0xff]  ;;  %v2340_v49 = vpack.c.bf16 %v826_v40, %v822_v39  ;;  %v828_v50 = vld [vmem:[#allocation8 + $0xb80] sm:$0xff] }
 0x193   :  { %v2070_v61 = vpack.c.bf16 %v801_v52, %v797_v51  ;;  %v835_v46 = vld [vmem:[#allocation8 + $0xbb8] sm:$0xff]  ;;  %v832_v51 = vld [vmem:[#allocation8 + $0xba0] sm:$0xff]  ;;  %v858_v39 = vld [vmem:[#allocation8 + $0xc70] sm:$0xff] }
 0x194   :  { %v2342_v53 = vpack.c.bf16 %v835_v46, %v831_v45  ;;  %v861_v40 = vld [vmem:[#allocation8 + $0xc88] sm:$0xff]  ;;  %v867_v45 = vld [vmem:[#allocation8 + $0xcb8] sm:$0xff] }
 0x195   :  { %2053 = vmatpush1.bf16.msra.mxu0 %v2052_v3  ;;  %2309 = vmatpush1.bf16.msra.mxu1 %v2308_v4  ;;  %v805_v3 = vld [vmem:[#allocation8 + $0xac8] sm:$0xff] }
 0x196   :  { %2055 = vmatprep.subr.bf16.mxu0 %v2054_v7  ;;  %2311 = vmatprep.subr.bf16.mxu1 %v2310_v0  ;;  %v809_v4 = vld [vmem:[#allocation8 + $0xae8] sm:$0xff]  ;;  %v2072_v7 = vpack.c.bf16 %v800_v13, %v796_v56  ;;  %v2328_v0 = vpack.c.bf16 %v802_v2, %v798_v1  ;;  %v839_v13 = vld [vmem:[#allocation8 + $0xbd8] sm:$0xff] }
 0x197   :  { %v2074_v41 = vpack.c.bf16 %v809_v4, %v805_v3  ;;  %v841_v56 = vld [vmem:[#allocation8 + $0xbe8] sm:$0xff]  ;;  %v2807_v1 = vld [vmem:[#allocation7] sm:$0xff]  ;;  %v2088_v3 = vpack.c.bf16 %v832_v51, %v828_v50 }
 0x199   :  { %2057 = vmatpush1.bf16.msra.mxu0 %v2056_v15  ;;  %2313 = vmatpush1.bf16.msra.mxu1 %v2312_v16  ;;  %v813_v15 = vld [vmem:[#allocation8 + $0xb08] sm:$0xff] }
 0x19a   :  { %2059 = vmatprep.subr.bf16.mxu0 %v2058_v19  ;;  %2315 = vmatprep.subr.bf16.mxu1 %v2314_v20  ;;  %v817_v16 = vld [vmem:[#allocation8 + $0xb28] sm:$0xff]  ;;  %v2076_v19 = vpack.c.bf16 %v808_v9, %v804_v8  ;;  %v2332_v20 = vpack.c.bf16 %v810_v14, %v806_v12  ;;  %v838_v8 = vld [vmem:[#allocation8 + $0xbd0] sm:$0xff]  ;;  %v847_v12 = vld [vmem:[#allocation8 + $0xc18] sm:$0xff] }
 0x19b   :  { %v2078_v23 = vpack.c.bf16 %v817_v16, %v813_v15  ;;  %v842_v9 = vld [vmem:[#allocation8 + $0xbf0] sm:$0xff]  ;;  %v851_v14 = vld [vmem:[#allocation8 + $0xc38] sm:$0xff] }
 0x19c   :  { %v2348_v18 = vpack.c.bf16 %v842_v9, %v838_v8  ;;  %v879_v8 = vld [vmem:[#allocation8 + $0xd18] sm:$0xff] }
 0x19d   :  { %2061 = vmatpush1.bf16.msra.mxu0 %v2060_v28  ;;  %2317 = vmatpush1.bf16.msra.mxu1 %v2316_v29  ;;  %v821_v28 = vld [vmem:[#allocation8 + $0xb48] sm:$0xff]  ;;  %v883_v9 = vld [vmem:[#allocation8 + $0xd38] sm:$0xff] }
 0x19e   :  { %2063 = vmatprep.subr.bf16.mxu0 %v2062_v31  ;;  %2319 = vmatprep.subr.bf16.mxu1 %v2318_v33  ;;  %v825_v29 = vld [vmem:[#allocation8 + $0xb68] sm:$0xff]  ;;  %v2080_v31 = vpack.c.bf16 %v816_v22, %v812_v21  ;;  %v2336_v33 = vpack.c.bf16 %v818_v27, %v814_v26  ;;  %v2350_v22 = vpack.c.bf16 %v851_v14, %v847_v12  ;;  %v876_v12 = vld [vmem:[#allocation8 + $0xd00] sm:$0xff] }
 0x19f   :  { %v2082_v37 = vpack.c.bf16 %v825_v29, %v821_v28  ;;  %v853_v26 = vld [vmem:[#allocation8 + $0xc48] sm:$0xff]  ;;  %v855_v28 = vld [vmem:[#allocation8 + $0xc58] sm:$0xff]  ;;  %v880_v14 = vld [vmem:[#allocation8 + $0xd20] sm:$0xff] }
 0x1a0   :  { %v857_v27 = vld [vmem:[#allocation8 + $0xc68] sm:$0xff]  ;;  %v859_v29 = vld [vmem:[#allocation8 + $0xc78] sm:$0xff] }
 0x1a1   :  { %2065 = vmatpush1.bf16.msra.mxu0 %v2064_v43  ;;  %2321 = vmatpush1.bf16.msra.mxu1 %v2320_v44  ;;  %v829_v43 = vld [vmem:[#allocation8 + $0xb88] sm:$0xff] }
 0x1a2   :  { %2067 = vmatprep.subr.bf16.mxu0 %v2066_v47  ;;  %2323 = vmatprep.subr.bf16.mxu1 %v2322_v48  ;;  %v833_v44 = vld [vmem:[#allocation8 + $0xba8] sm:$0xff]  ;;  %v142_v47 = vsub.s32 4, %v2771_v57  ;;  %v2084_v48 = vpack.c.bf16 %v824_v36, %v820_v34  ;;  %v856_v34 = vld [vmem:[#allocation8 + $0xc60] sm:$0xff]  ;;  %v2098_v36 = vpack.c.bf16 %v857_v27, %v853_v26 }
 0x1a3   :  { %v2086_v52 = vpack.c.bf16 %v833_v44, %v829_v43  ;;  %v865_v43 = vld [vmem:[#allocation8 + $0xca8] sm:$0xff]  ;;  %v863_v44 = vld [vmem:[#allocation8 + $0xc98] sm:$0xff]  ;;  %v884_v26 = vld [vmem:[#allocation8 + $0xd40] sm:$0xff] }
 0x1a4   :  { %v143_v2 = vrot.slane %v2807_v1, %v142_v47  ;;  %v2102_v50 = vpack.c.bf16 %v865_v43, %v861_v40  ;;  %v2358_v51 = vpack.c.bf16 %v867_v45, %v863_v44  ;;  %v888_v27 = vld [vmem:[#allocation8 + $0xd60] sm:$0xff]  ;;  %v894_v44 = vld [vmem:[#allocation8 + $0xd90] sm:$0xff] }
 0x1a5   :  { %2069 = vmatpush1.bf16.msra.mxu0 %v2068_v55  ;;  %2325 = vmatpush1.bf16.msra.mxu1 %v2324_v59  ;;  %v834_v55 = vld [vmem:[#allocation8 + $0xbb0] sm:$0xff]  ;;  %v837_v59 = vld [vmem:[#allocation8 + $0xbc8] sm:$0xff] }
 0x1a6   :  { %2071 = vmatprep.subr.bf16.mxu0 %v2070_v61  ;;  %2327 = vmatprep.subr.bf16.mxu1 %v2326_v63  ;;  %v843_v61 = vld [vmem:[#allocation8 + $0xbf8] sm:$0xff]  ;;  %v154_v63 = vsub.s32 7, %v2771_v57  ;;  %v2344_v4 = vpack.c.bf16 %v834_v55, %v830_v54  ;;  %v377_v16 = vadd.f32 %v2789_v35, %v143_v2  ;;  %v869_v54 = vld [vmem:[#allocation8 + $0xcc8] sm:$0xff]  ;;  %v872_v2 = vld [vmem:[#allocation8 + $0xce0] sm:$0xff] }
 0x1a7   :  { %v873_v55 = vld [vmem:[#allocation8 + $0xce8] sm:$0xff]  ;;  %v898_v45 = vld [vmem:[#allocation8 + $0xdb0] sm:$0xff] }
 0x1a8   :  { %v155_v15 = vrot.slane %v2807_v1, %v154_v63  ;;  %v456_v25 = vmax.f32 %v377_v16, 0.0  ;;  %v868_v63 = vld [vmem:[#allocation8 + $0xcc0] sm:$0xff]  ;;  %v2366_v16 = vpack.c.bf16 %v883_v9, %v879_v8  ;;  %v914_v8 = vld [vmem:[#allocation8 + $0xe30] sm:$0xff]  ;;  %v917_v9 = vld [vmem:[#allocation8 + $0xe48] sm:$0xff] }
 0x1a9   :  { %2073 = vmatpush1.bf16.msra.mxu0 %v2072_v7  ;;  %2329 = vmatpush1.bf16.msra.mxu1 %v2328_v0  ;;  %v2090_v7 = vpack.c.bf16 %v841_v56, %v837_v59  ;;  %v2346_v0 = vpack.c.bf16 %v843_v61, %v839_v13  ;;  %v871_v59 = vld [vmem:[#allocation8 + $0xcd8] sm:$0xff] }
 0x1aa   :  { %2075 = vmatprep.subr.bf16.mxu0 %v2074_v41  ;;  %2331 = vmatprep.subr.bf16.mxu1 %v2330_v11  ;;  %v845_v41 = vld [vmem:[#allocation8 + $0xc08] sm:$0xff]  ;;  %v450_v30 = vadd.f32 %v2795_v42, %v155_v15  ;;  %v875_v56 = vld [vmem:[#allocation8 + $0xcf8] sm:$0xff] }
 0x1ab   :  { %v849_v11 = vld [vmem:[#allocation8 + $0xc28] sm:$0xff] }
 0x1ac   :  { %v2094_v21 = vpack.c.bf16 %v849_v11, %v845_v41  ;;  %v459_v46 = vmax.f32 %v450_v30, 0.0  ;;  %v2108_v41 = vpack.c.bf16 %v872_v2, %v868_v63  ;;  %v2364_v11 = vpack.c.bf16 %v874_v6, %v870_v5  ;;  %v886_v30 = vld [vmem:[#allocation8 + $0xd50] sm:$0xff]  ;;  %v915_v63 = vld [vmem:[#allocation8 + $0xe38] sm:$0xff]  ;;  %v912_v5 = vld [vmem:[#allocation8 + $0xe20] sm:$0xff] }
 0x1ad   :  { %2077 = vmatpush1.bf16.msra.mxu0 %v2076_v19  ;;  %2333 = vmatpush1.bf16.msra.mxu1 %v2332_v20  ;;  %v844_v19 = vld [vmem:[#allocation8 + $0xc00] sm:$0xff] }
 0x1ae   :  { %2079 = vmatprep.subr.bf16.mxu0 %v2078_v23  ;;  %2335 = vmatprep.subr.bf16.mxu1 %v2334_v24  ;;  %v848_v20 = vld [vmem:[#allocation8 + $0xc20] sm:$0xff]  ;;  %v846_v23 = vld [vmem:[#allocation8 + $0xc10] sm:$0xff] }
 0x1af   :  { %v850_v24 = vld [vmem:[#allocation8 + $0xc30] sm:$0xff]  ;;  %v2096_v35 = vpack.c.bf16 %v848_v20, %v844_v19  ;;  %v885_v19 = vld [vmem:[#allocation8 + $0xd48] sm:$0xff] }
 0x1b0   :  { %v889_v20 = vld [vmem:[#allocation8 + $0xd68] sm:$0xff] }
 0x1b1   :  { %2081 = vmatpush1.bf16.msra.mxu0 %v2080_v31  ;;  %2337 = vmatpush1.bf16.msra.mxu1 %v2336_v33  ;;  %v2352_v31 = vpack.c.bf16 %v850_v24, %v846_v23  ;;  %v852_v33 = vld [vmem:[#allocation8 + $0xc40] sm:$0xff]  ;;  %v2112_v23 = vpack.c.bf16 %v880_v14, %v876_v12  ;;  %v923_v12 = vld [vmem:[#allocation8 + $0xe78] sm:$0xff] }
 0x1b2   :  { %2083 = vmatprep.subr.bf16.mxu0 %v2082_v37  ;;  %2339 = vmatprep.subr.bf16.mxu1 %v2338_v38  ;;  %v2354_v37 = vpack.c.bf16 %v859_v29, %v855_v28  ;;  %v854_v38 = vld [vmem:[#allocation8 + $0xc50] sm:$0xff]  ;;  %v2100_v42 = vpack.c.bf16 %v856_v34, %v852_v33  ;;  %v2114_v28 = vpack.c.bf16 %v889_v20, %v885_v19  ;;  %v895_v33 = vld [vmem:[#allocation8 + $0xd98] sm:$0xff] }
 0x1b3   :  { %v2356_v47 = vpack.c.bf16 %v858_v39, %v854_v38  ;;  %v899_v34 = vld [vmem:[#allocation8 + $0xdb8] sm:$0xff]  ;;  %v892_v38 = vld [vmem:[#allocation8 + $0xd80] sm:$0xff]  ;;  %v918_v20 = vld [vmem:[#allocation8 + $0xe50] sm:$0xff] }
 0x1b4   :  { %v896_v39 = vld [vmem:[#allocation8 + $0xda0] sm:$0xff]  ;;  %v2374_v43 = vpack.c.bf16 %v899_v34, %v895_v33  ;;  %v930_v33 = vld [vmem:[#allocation8 + $0xeb0] sm:$0xff]  ;;  %v933_v34 = vld [vmem:[#allocation8 + $0xec8] sm:$0xff] }
 0x1b5   :  { %2085 = vmatpush1.bf16.msra.mxu0 %v2084_v48  ;;  %2341 = vmatpush1.bf16.msra.mxu1 %v2340_v49  ;;  %v860_v48 = vld [vmem:[#allocation8 + $0xc80] sm:$0xff] }
 0x1b6   :  { %2087 = vmatprep.subr.bf16.mxu0 %v2086_v52  ;;  %2343 = vmatprep.subr.bf16.mxu1 %v2342_v53  ;;  %v864_v49 = vld [vmem:[#allocation8 + $0xca0] sm:$0xff]  ;;  %v862_v52 = vld [vmem:[#allocation8 + $0xc90] sm:$0xff] }
 0x1b7   :  { %v866_v53 = vld [vmem:[#allocation8 + $0xcb0] sm:$0xff]  ;;  %v2104_v13 = vpack.c.bf16 %v864_v49, %v860_v48  ;;  %v907_v48 = vld [vmem:[#allocation8 + $0xdf8] sm:$0xff]  ;;  %v2120_v49 = vpack.c.bf16 %v896_v39, %v892_v38 }
 0x1b8   :  { %v2360_v61 = vpack.c.bf16 %v866_v53, %v862_v52  ;;  %v904_v52 = vld [vmem:[#allocation8 + $0xde0] sm:$0xff]  ;;  %v939_v38 = vld [vmem:[#allocation8 + $0xef8] sm:$0xff] }
 0x1b9   :  { %2089 = vmatpush1.bf16.msra.mxu0 %v2088_v3  ;;  %2345 = vmatpush1.bf16.msra.mxu1 %v2344_v4  ;;  %v2106_v3 = vpack.c.bf16 %v873_v55, %v869_v54  ;;  %v2362_v4 = vpack.c.bf16 %v875_v56, %v871_v59  ;;  %v902_v55 = vld [vmem:[#allocation8 + $0xdd0] sm:$0xff]  ;;  %v909_v56 = vld [vmem:[#allocation8 + $0xe08] sm:$0xff] }
 0x1ba   :  { %2091 = vmatprep.subr.bf16.mxu0 %v2090_v7  ;;  %2347 = vmatprep.subr.bf16.mxu1 %v2346_v0  ;;  %v877_v7 = vld [vmem:[#allocation8 + $0xd08] sm:$0xff]  ;;  %v906_v59 = vld [vmem:[#allocation8 + $0xdf0] sm:$0xff] }
 0x1bb   :  { %v881_v0 = vld [vmem:[#allocation8 + $0xd28] sm:$0xff] }
 0x1bc   :  { %v2110_v15 = vpack.c.bf16 %v881_v0, %v877_v7  ;;  %v910_v0 = vld [vmem:[#allocation8 + $0xe10] sm:$0xff] }
 0x1bd   :  { %2093 = vmatpush1.bf16.msra.mxu0 %v2092_v17  ;;  %2349 = vmatpush1.bf16.msra.mxu1 %v2348_v18  ;;  %v878_v17 = vld [vmem:[#allocation8 + $0xd10] sm:$0xff] }
 0x1be   :  { %2095 = vmatprep.subr.bf16.mxu0 %v2094_v21  ;;  %2351 = vmatprep.subr.bf16.mxu1 %v2350_v22  ;;  %v882_v18 = vld [vmem:[#allocation8 + $0xd30] sm:$0xff]  ;;  %v887_v21 = vld [vmem:[#allocation8 + $0xd58] sm:$0xff] }
 0x1bf   :  { %v891_v22 = vld [vmem:[#allocation8 + $0xd78] sm:$0xff]  ;;  %v2368_v24 = vpack.c.bf16 %v882_v18, %v878_v17  ;;  %v920_v17 = vld [vmem:[#allocation8 + $0xe60] sm:$0xff] }
 0x1c0   :  { %1201 = vmatmul.mubr.f32.vlgmr.msra.gmra.mrb[4].mxu0 %v456_v25  ;;  %1485 = vmatmul.mubr.f32.vlgmr.msra.gmra.mrb[4].mxu1 %v456_v25  ;;  %v2370_v29 = vpack.c.bf16 %v891_v22, %v887_v21  ;;  %v890_v25 = vld [vmem:[#allocation8 + $0xd70] sm:$0xff]  ;;  %v925_v22 = vld [vmem:[#allocation8 + $0xe88] sm:$0xff] }
 0x1c1   :  { %2097 = vmatpush1.bf16.msra.mxu0 %v2096_v35  ;;  %2353 = vmatpush1.bf16.msra.mxu1 %v2352_v31  ;;  %v893_v35 = vld [vmem:[#allocation8 + $0xd88] sm:$0xff]  ;;  %v922_v21 = vld [vmem:[#allocation8 + $0xe70] sm:$0xff] }
 0x1c2   :  { %2099 = vmatprep.subr.bf16.mxu0 %v2098_v36  ;;  %2355 = vmatprep.subr.bf16.mxu1 %v2354_v37  ;;  %v897_v31 = vld [vmem:[#allocation8 + $0xda8] sm:$0xff]  ;;  %v2116_v36 = vpack.c.bf16 %v888_v27, %v884_v26  ;;  %v2372_v37 = vpack.c.bf16 %v890_v25, %v886_v30  ;;  %v931_v26 = vld [vmem:[#allocation8 + $0xeb8] sm:$0xff]  ;;  %v928_v30 = vld [vmem:[#allocation8 + $0xea0] sm:$0xff] }
 0x1c3   :  { %1271 = vmatprep.mubr.f32.mxu0 %v459_v46  ;;  %1555 = vmatprep.mubr.f32.mxu1 %v459_v46  ;;  %v2118_v40 = vpack.c.bf16 %v897_v31, %v893_v35  ;;  %v901_v46 = vld [vmem:[#allocation8 + $0xdc8] sm:$0xff]  ;;  %v926_v31 = vld [vmem:[#allocation8 + $0xe90] sm:$0xff] }
 0x1c5   :  { %2101 = vmatpush1.bf16.msra.mxu0 %v2100_v42  ;;  %2357 = vmatpush1.bf16.msra.mxu1 %v2356_v47  ;;  %v905_v42 = vld [vmem:[#allocation8 + $0xde8] sm:$0xff]  ;;  %v903_v47 = vld [vmem:[#allocation8 + $0xdd8] sm:$0xff] }
 0x1c6   :  { %2103 = vmatprep.subr.bf16.mxu0 %v2102_v50  ;;  %2359 = vmatprep.subr.bf16.mxu1 %v2358_v51  ;;  %v2376_v50 = vpack.c.bf16 %v898_v45, %v894_v44  ;;  %v900_v51 = vld [vmem:[#allocation8 + $0xdc0] sm:$0xff]  ;;  %v2122_v53 = vpack.c.bf16 %v905_v42, %v901_v46  ;;  %v2378_v54 = vpack.c.bf16 %v907_v48, %v903_v47  ;;  %v934_v42 = vld [vmem:[#allocation8 + $0xed0] sm:$0xff]  ;;  %v941_v48 = vld [vmem:[#allocation8 + $0xf08] sm:$0xff] }
 0x1c7   :  { %v2124_v2 = vpack.c.bf16 %v904_v52, %v900_v51  ;;  %v936_v44 = vld [vmem:[#allocation8 + $0xee0] sm:$0xff]  ;;  %v938_v47 = vld [vmem:[#allocation8 + $0xef0] sm:$0xff]  ;;  %v947_v51 = vld [vmem:[#allocation8 + $0xf38] sm:$0xff] }
 0x1c9   :  { %2105 = vmatpush1.bf16.msra.mxu0 %v2104_v13  ;;  %2361 = vmatpush1.bf16.msra.mxu1 %v2360_v61  ;;  %v913_v13 = vld [vmem:[#allocation8 + $0xe28] sm:$0xff]  ;;  %v911_v61 = vld [vmem:[#allocation8 + $0xe18] sm:$0xff] }
 0x1ca   :  { %2107 = vmatprep.subr.bf16.mxu0 %v2106_v3  ;;  %2363 = vmatprep.subr.bf16.mxu1 %v2362_v4  ;;  %v2380_v3 = vpack.c.bf16 %v906_v59, %v902_v55  ;;  %v908_v4 = vld [vmem:[#allocation8 + $0xe00] sm:$0xff]  ;;  %v2126_v6 = vpack.c.bf16 %v913_v13, %v909_v56  ;;  %v2382_v7 = vpack.c.bf16 %v915_v63, %v911_v61  ;;  %v942_v13 = vld [vmem:[#allocation8 + $0xf10] sm:$0xff]  ;;  %v949_v63 = vld [vmem:[#allocation8 + $0xf48] sm:$0xff] }
 0x1cb   :  { %v2128_v14 = vpack.c.bf16 %v912_v5, %v908_v4  ;;  %v944_v55 = vld [vmem:[#allocation8 + $0xf20] sm:$0xff]  ;;  %v946_v61 = vld [vmem:[#allocation8 + $0xf30] sm:$0xff]  ;;  %v955_v4 = vld [vmem:[#allocation8 + $0xf78] sm:$0xff] }
 0x1cd   :  { %2109 = vmatpush1.bf16.msra.mxu0 %v2108_v41  ;;  %2365 = vmatpush1.bf16.msra.mxu1 %v2364_v11  ;;  %v921_v41 = vld [vmem:[#allocation8 + $0xe68] sm:$0xff]  ;;  %v919_v11 = vld [vmem:[#allocation8 + $0xe58] sm:$0xff] }
 0x1ce   :  { %2111 = vmatprep.subr.bf16.mxu0 %v2110_v15  ;;  %2367 = vmatprep.subr.bf16.mxu1 %v2366_v16  ;;  %v2384_v15 = vpack.c.bf16 %v914_v8, %v910_v0  ;;  %v916_v16 = vld [vmem:[#allocation8 + $0xe40] sm:$0xff]  ;;  %v2130_v18 = vpack.c.bf16 %v921_v41, %v917_v9  ;;  %v2386_v19 = vpack.c.bf16 %v923_v12, %v919_v11  ;;  %v950_v41 = vld [vmem:[#allocation8 + $0xf50] sm:$0xff]  ;;  %v957_v12 = vld [vmem:[#allocation8 + $0xf88] sm:$0xff] }
 0x1cf   :  { %v2132_v27 = vpack.c.bf16 %v920_v17, %v916_v16  ;;  %v952_v0 = vld [vmem:[#allocation8 + $0xf60] sm:$0xff]  ;;  %v954_v11 = vld [vmem:[#allocation8 + $0xf70] sm:$0xff]  ;;  %v963_v16 = vld [vmem:[#allocation8 + $0xfb8] sm:$0xff] }
 0x1d1   :  { %2113 = vmatpush1.bf16.msra.mxu0 %v2112_v23  ;;  %2369 = vmatpush1.bf16.msra.mxu1 %v2368_v24  ;;  %v929_v23 = vld [vmem:[#allocation8 + $0xea8] sm:$0xff]  ;;  %v927_v24 = vld [vmem:[#allocation8 + $0xe98] sm:$0xff] }
 0x1d2   :  { %2115 = vmatprep.subr.bf16.mxu0 %v2114_v28  ;;  %2371 = vmatprep.subr.bf16.mxu1 %v2370_v29  ;;  %v2388_v28 = vpack.c.bf16 %v922_v21, %v918_v20  ;;  %v924_v29 = vld [vmem:[#allocation8 + $0xe80] sm:$0xff]  ;;  %v2134_v25 = vpack.c.bf16 %v929_v23, %v925_v22  ;;  %v2390_v35 = vpack.c.bf16 %v931_v26, %v927_v24  ;;  %v150_v21 = vsub.s32 6, %v2771_v57  ;;  %v958_v24 = vld [vmem:[#allocation8 + $0xf90] sm:$0xff] }
 0x1d3   :  { %v2136_v39 = vpack.c.bf16 %v928_v30, %v924_v29  ;;  %v960_v20 = vld [vmem:[#allocation8 + $0xfa0] sm:$0xff]  ;;  %v962_v26 = vld [vmem:[#allocation8 + $0xfb0] sm:$0xff]  ;;  %v967_v29 = vld [vmem:[#allocation8 + $0xfd8] sm:$0xff] }
 0x1d4   :  { %v971_v30 = vld [vmem:[#allocation8 + $0xff8] sm:$0xff]  ;;  %v1799_v57 = vld [vmem:[%s3037_s6] ss:$0 sm:$0xff] }
 0x1d5   :  { %2117 = vmatpush1.bf16.msra.mxu0 %v2116_v36  ;;  %2373 = vmatpush1.bf16.msra.mxu1 %v2372_v37  ;;  %v937_v36 = vld [vmem:[#allocation8 + $0xee8] sm:$0xff]  ;;  %v935_v37 = vld [vmem:[#allocation8 + $0xed8] sm:$0xff] }
 0x1d6   :  { %2119 = vmatprep.subr.bf16.mxu0 %v2118_v40  ;;  %2375 = vmatprep.subr.bf16.mxu1 %v2374_v43  ;;  %v2392_v40 = vpack.c.bf16 %v930_v33, %v926_v31  ;;  %v932_v43 = vld [vmem:[#allocation8 + $0xec0] sm:$0xff]  ;;  %v2138_v45 = vpack.c.bf16 %v937_v36, %v933_v34  ;;  %v2394_v46 = vpack.c.bf16 %v939_v38, %v935_v37  ;;  %v966_v38 = vld [vmem:[#allocation8 + $0xfd0] sm:$0xff] }
 0x1d7   :  { %v2140_v52 = vpack.c.bf16 %v936_v44, %v932_v43  ;;  %v964_v31 = vld [vmem:[#allocation8 + $0xfc0] sm:$0xff]  ;;  %v151_v34 = vrot.slane %v2807_v1, %v150_v21  ;;  %v2410_v37 = vpack.c.bf16 %v971_v30, %v967_v29  ;;  %v1583_v43 = vld [vmem:[%s3036_s5 + $0x88] sm:$0xff]  ;;  %v1614_v44 = vld [vmem:[%s3036_s5 + $0x180] sm:$0xff] }
 0x1d8   :  { %v968_v33 = vld [vmem:[#allocation8 + $0xfe0] sm:$0xff]  ;;  %v1615_v1 = vld [vmem:[%s3036_s5 + $0x188] sm:$0xff]  ;;  %v1621_v21 = vld [vmem:[%s3036_s5 + $0x1b8] sm:$0xff] }
 0x1d9   :  { %2121 = vmatpush1.bf16.msra.mxu0 %v2120_v49  ;;  %2377 = vmatpush1.bf16.msra.mxu1 %v2376_v50  ;;  %v945_v49 = vld [vmem:[#allocation8 + $0xf28] sm:$0xff]  ;;  %v943_v50 = vld [vmem:[#allocation8 + $0xf18] sm:$0xff]  ;;  %v1604_v29 = vld [vmem:[%s3036_s5 + $0x130] sm:$0xff] }
 0x1da   :  { %2123 = vmatprep.subr.bf16.mxu0 %v2122_v53  ;;  %2379 = vmatprep.subr.bf16.mxu1 %v2378_v54  ;;  %v2396_v53 = vpack.c.bf16 %v938_v47, %v934_v42  ;;  %v940_v54 = vld [vmem:[#allocation8 + $0xf00] sm:$0xff]  ;;  %v2142_v59 = vpack.c.bf16 %v945_v49, %v941_v48  ;;  %v2398_v56 = vpack.c.bf16 %v947_v51, %v943_v50  ;;  %v1566_v42 = vld [vmem:[%s3036_s5] sm:$0xff]  ;;  %v1567_v47 = vld [vmem:[%s3036_s5 + $0x8] sm:$0xff] }
 0x1db   :  { %v2144_v5 = vpack.c.bf16 %v944_v55, %v940_v54  ;;  %v448_v48 = vadd.f32 %v2793_v32, %v151_v34  ;;  %v2446_v50 = vpack.c.bf16 %v1615_v1, %v1614_v44  ;;  %v1598_v51 = vld [vmem:[%s3036_s5 + $0x100] sm:$0xff]  ;;  %v1585_v32 = vld [vmem:[%s3036_s5 + $0x98] sm:$0xff]  ;;  %v1616_v54 = vld [vmem:[%s3036_s5 + $0x190] sm:$0xff] }
 0x1dc   :  { %v1617_v55 = vld [vmem:[%s3036_s5 + $0x198] sm:$0xff]  ;;  %v1607_v44 = vld [vmem:[%s3036_s5 + $0x148] sm:$0xff]  ;;  %v1592_v1 = vld [vmem:[%s3036_s5 + $0xd0] sm:$0xff] }
 0x1dd   :  { %2125 = vmatpush1.bf16.msra.mxu0 %v2124_v2  ;;  %2381 = vmatpush1.bf16.msra.mxu1 %v2380_v3  ;;  %v953_v2 = vld [vmem:[#allocation8 + $0xf68] sm:$0xff]  ;;  %v951_v3 = vld [vmem:[#allocation8 + $0xf58] sm:$0xff] }
 0x1de   :  { %2127 = vmatprep.subr.bf16.mxu0 %v2126_v6  ;;  %2383 = vmatprep.subr.bf16.mxu1 %v2382_v7  ;;  %v2400_v6 = vpack.c.bf16 %v946_v61, %v942_v13  ;;  %v948_v7 = vld [vmem:[#allocation8 + $0xf40] sm:$0xff]  ;;  %v2146_v8 = vpack.c.bf16 %v953_v2, %v949_v63  ;;  %v2402_v9 = vpack.c.bf16 %v955_v4, %v951_v3  ;;  %v1569_v61 = vld [vmem:[%s3036_s5 + $0x18] sm:$0xff]  ;;  %v458_v63 = vmax.f32 %v448_v48, 0.0 }
 0x1df   :  { %v2148_v17 = vpack.c.bf16 %v952_v0, %v948_v7  ;;  %v1568_v13 = vld [vmem:[%s3036_s5 + $0x10] sm:$0xff]  ;;  %v2450_v3 = vpack.c.bf16 %v1617_v55, %v1616_v54  ;;  %v1587_v7 = vld [vmem:[%s3036_s5 + $0xa8] sm:$0xff]  ;;  %v1618_v0 = vld [vmem:[%s3036_s5 + $0x1a0] sm:$0xff] }
 0x1e0   :  { %v1600_v4 = vld [vmem:[%s3036_s5 + $0x110] sm:$0xff]  ;;  %v1605_v30 = vld [vmem:[%s3036_s5 + $0x138] sm:$0xff]  ;;  %v1594_v54 = vld [vmem:[%s3036_s5 + $0xe0] sm:$0xff] }
 0x1e1   :  { %2129 = vmatpush1.bf16.msra.mxu0 %v2128_v14  ;;  %2385 = vmatpush1.bf16.msra.mxu1 %v2384_v15  ;;  %v961_v14 = vld [vmem:[#allocation8 + $0xfa8] sm:$0xff]  ;;  %v959_v15 = vld [vmem:[#allocation8 + $0xf98] sm:$0xff] }
 0x1e2   :  { %2131 = vmatprep.subr.bf16.mxu0 %v2130_v18  ;;  %2387 = vmatprep.subr.bf16.mxu1 %v2386_v19  ;;  %v2404_v18 = vpack.c.bf16 %v954_v11, %v950_v41  ;;  %v956_v19 = vld [vmem:[#allocation8 + $0xf80] sm:$0xff]  ;;  %v2150_v22 = vpack.c.bf16 %v961_v14, %v957_v12  ;;  %v2406_v23 = vpack.c.bf16 %v963_v16, %v959_v15  ;;  %v1570_v11 = vld [vmem:[%s3036_s5 + $0x20] sm:$0xff]  ;;  %v1571_v12 = vld [vmem:[%s3036_s5 + $0x28] sm:$0xff] }
 0x1e3   :  { %v1602_v16 = vld [vmem:[%s3036_s5 + $0x120] sm:$0xff]  ;;  %v1595_v55 = vld [vmem:[%s3036_s5 + $0xe8] sm:$0xff] }
 0x1e5   :  { %2133 = vmatpush1.bf16.msra.mxu0 %v2132_v27  ;;  %2389 = vmatpush1.bf16.msra.mxu1 %v2388_v28  ;;  %v965_v27 = vld [vmem:[#allocation8 + $0xfc8] sm:$0xff] }
 0x1e6   :  { %2135 = vmatprep.subr.bf16.mxu0 %v2134_v25  ;;  %2391 = vmatprep.subr.bf16.mxu1 %v2390_v35  ;;  %v969_v28 = vld [vmem:[#allocation8 + $0xfe8] sm:$0xff]  ;;  %v2152_v25 = vpack.c.bf16 %v960_v20, %v956_v19  ;;  %v2408_v35 = vpack.c.bf16 %v962_v26, %v958_v24  ;;  %v1620_v20 = vld [vmem:[%s3036_s5 + $0x1b0] sm:$0xff] }
 0x1e7   :  { %v2154_v36 = vpack.c.bf16 %v969_v28, %v965_v27  ;;  %v1589_v19 = vld [vmem:[%s3036_s5 + $0xb8] sm:$0xff]  ;;  %v1572_v24 = vld [vmem:[%s3036_s5 + $0x30] sm:$0xff]  ;;  %v2458_v28 = vpack.c.bf16 %v1621_v21, %v1620_v20 }
 0x1e8   :  { %v1573_v26 = vld [vmem:[%s3036_s5 + $0x38] sm:$0xff]  ;;  %v972_v21 = vld [vmem:[#allocation10] sm:$0xf] }
 0x1e9   :  { %2137 = vmatpush1.bf16.msra.mxu0 %v2136_v39  ;;  %2393 = vmatpush1.bf16.msra.mxu1 %v2392_v40  ;;  %v970_v39 = vld [vmem:[#allocation8 + $0xff0] sm:$0xff]  ;;  %v2428_v34 = vpack.c.bf16 %v1573_v26, %v1572_v24  ;;  %v981_v24 = vrot.slane %v972_v21, %v130_v60  ;;  %v989_v26 = vrot.slane %v972_v21, %v138_v62 }
 0x1ea   :  { %2139 = vmatprep.subr.bf16.mxu0 %v2138_v45  ;;  %2395 = vmatprep.subr.bf16.mxu1 %v2394_v46  ;;  %v1582_v40 = vld [vmem:[%s3036_s5 + $0x80] sm:$0xff]  ;;  %v2156_v45 = vpack.c.bf16 %v968_v33, %v964_v31  ;;  %v2412_v46 = vpack.c.bf16 %v970_v39, %v966_v38  ;;  %v1623_v33 = vld [vmem:[%s3036_s5 + $0x1c8] sm:$0xff] }
 0x1eb   :  { %v2414_v49 = vpack.c.bf16 %v1583_v43, %v1582_v40  ;;  %v1622_v31 = vld [vmem:[%s3036_s5 + $0x1c0] sm:$0xff]  ;;  %v1575_v38 = vld [vmem:[%s3036_s5 + $0x48] sm:$0xff] }
 0x1ec   :  { %v2462_v40 = vpack.c.bf16 %v1623_v33, %v1622_v31  ;;  %v1606_v43 = vld [vmem:[%s3036_s5 + $0x140] sm:$0xff] }
 0x1ed   :  { %2141 = vmatpush1.bf16.msra.mxu0 %v2140_v52  ;;  %2397 = vmatpush1.bf16.msra.mxu1 %v2396_v53  ;;  %v1599_v52 = vld [vmem:[%s3036_s5 + $0x108] sm:$0xff]  ;;  %v1584_v53 = vld [vmem:[%s3036_s5 + $0x90] sm:$0xff]  ;;  %v2464_v48 = vpack.c.bf16 %v1607_v44, %v1606_v43 }
 0x1ee   :  { %2143 = vmatprep.subr.bf16.mxu0 %v2142_v59  ;;  %2399 = vmatprep.subr.bf16.mxu1 %v2398_v56  ;;  %v2416_v59 = vpack.c.bf16 %v1567_v47, %v1566_v42  ;;  %v2448_v56 = vpack.c.bf16 %v1599_v52, %v1598_v51  ;;  %v2418_v2 = vpack.c.bf16 %v1585_v32, %v1584_v53  ;;  %v1625_v42 = vld [vmem:[%s3036_s5 + $0x1d8] sm:$0xff]  ;;  %v1608_v53 = vld [vmem:[%s3036_s5 + $0x150] sm:$0xff] }
 0x1ef   :  { %v1609_v32 = vld [vmem:[%s3036_s5 + $0x158] sm:$0xff] }
 0x1f1   :  { %2145 = vmatpush1.bf16.msra.mxu0 %v2144_v5  ;;  %2401 = vmatpush1.bf16.msra.mxu1 %v2400_v6  ;;  %v1601_v5 = vld [vmem:[%s3036_s5 + $0x118] sm:$0xff]  ;;  %v1586_v6 = vld [vmem:[%s3036_s5 + $0xa0] sm:$0xff] }
 0x1f2   :  { %2147 = vmatprep.subr.bf16.mxu0 %v2146_v8  ;;  %2403 = vmatprep.subr.bf16.mxu1 %v2402_v9  ;;  %v1619_v8 = vld [vmem:[%s3036_s5 + $0x1a8] sm:$0xff]  ;;  %v2420_v9 = vpack.c.bf16 %v1569_v61, %v1568_v13  ;;  %v2452_v41 = vpack.c.bf16 %v1601_v5, %v1600_v4  ;;  %v2422_v14 = vpack.c.bf16 %v1587_v7, %v1586_v6  ;;  %v1610_v5 = vld [vmem:[%s3036_s5 + $0x160] sm:$0xff] }
 0x1f3   :  { %v2454_v15 = vpack.c.bf16 %v1619_v8, %v1618_v0  ;;  %v2468_v61 = vpack.c.bf16 %v1609_v32, %v1608_v53  ;;  %v1579_v4 = vld [vmem:[%s3036_s5 + $0x68] sm:$0xff]  ;;  %v1596_v8 = vld [vmem:[%s3036_s5 + $0xf0] sm:$0xff] }
 0x1f4   :  { %v1611_v7 = vld [vmem:[%s3036_s5 + $0x168] sm:$0xff] }
 0x1f5   :  { %2149 = vmatpush1.bf16.msra.mxu0 %v2148_v17  ;;  %2405 = vmatpush1.bf16.msra.mxu1 %v2404_v18  ;;  %v1603_v17 = vld [vmem:[%s3036_s5 + $0x128] sm:$0xff]  ;;  %v1588_v18 = vld [vmem:[%s3036_s5 + $0xb0] sm:$0xff]  ;;  %v2472_v0 = vpack.c.bf16 %v1611_v7, %v1610_v5 }
 0x1f6   :  { %2151 = vmatprep.subr.bf16.mxu0 %v2150_v22  ;;  %2407 = vmatprep.subr.bf16.mxu1 %v2406_v23  ;;  %v2424_v22 = vpack.c.bf16 %v1571_v12, %v1570_v11  ;;  %v2456_v23 = vpack.c.bf16 %v1603_v17, %v1602_v16  ;;  %v2426_v27 = vpack.c.bf16 %v1589_v19, %v1588_v18  ;;  %v1629_v12 = vld [vmem:[%s3036_s5 + $0x1f8] sm:$0xff]  ;;  %v1612_v18 = vld [vmem:[%s3036_s5 + $0x170] sm:$0xff] }
 0x1f7   :  { %v1613_v19 = vld [vmem:[%s3036_s5 + $0x178] sm:$0xff] }
 0x1f8   :  { %v2476_v20 = vpack.c.bf16 %v1613_v19, %v1612_v18 }
 0x1f9   :  { %2153 = vmatpush1.bf16.msra.mxu0 %v2152_v25  ;;  %2409 = vmatpush1.bf16.msra.mxu1 %v2408_v35  ;;  %v1590_v25 = vld [vmem:[%s3036_s5 + $0xc0] sm:$0xff]  ;;  %v1591_v35 = vld [vmem:[%s3036_s5 + $0xc8] sm:$0xff] }
 0x1fa   :  { %2155 = vmatprep.subr.bf16.mxu0 %v2154_v36  ;;  %2411 = vmatprep.subr.bf16.mxu1 %v2410_v37  ;;  %v2460_v36 = vpack.c.bf16 %v1605_v30, %v1604_v29  ;;  %v1574_v37 = vld [vmem:[%s3036_s5 + $0x40] sm:$0xff]  ;;  %v2430_v39 = vpack.c.bf16 %v1591_v35, %v1590_v25 }
 0x1fb   :  { %v2432_v47 = vpack.c.bf16 %v1575_v38, %v1574_v37 }
 0x1fd   :  { %2157 = vmatpush1.bf16.msra.mxu0 %v2156_v45  ;;  %2413 = vmatpush1.bf16.msra.mxu1 %v2412_v46  ;;  %v1593_v45 = vld [vmem:[%s3036_s5 + $0xd8] sm:$0xff]  ;;  %v1624_v46 = vld [vmem:[%s3036_s5 + $0x1d0] sm:$0xff] }
 0x1fe   :  { %2415 = vmatprep.subr.bf16.mxu0 %v2414_v49  ;;  %2447 = vmatprep.subr.bf16.mxu1 %v2446_v50  ;;  %v1576_v49 = vld [vmem:[%s3036_s5 + $0x50] sm:$0xff]  ;;  %v1577_v50 = vld [vmem:[%s3036_s5 + $0x58] sm:$0xff]  ;;  %v2434_v51 = vpack.c.bf16 %v1593_v45, %v1592_v1  ;;  %v2466_v52 = vpack.c.bf16 %v1625_v42, %v1624_v46 }
 0x1ff   :  { %v2436_v13 = vpack.c.bf16 %v1577_v50, %v1576_v49 }
 0x200   :  { %1272 = vmatmul.mubr.f32.vlgmr.msra.gmra.mrb[4].mxu0 %v458_v63  ;;  %1556 = vmatmul.mubr.f32.vlgmr.msra.gmra.mrb[4].mxu1 %v458_v63  ;;  %v2438_v63 = vpack.c.bf16 %v1595_v55, %v1594_v54 }
 0x201   :  { %2417 = vmatpush3.bf16.msra.mxu0 %v2416_v59  ;;  %2449 = vmatpush3.bf16.msra.mxu1 %v2448_v56  ;;  %v1626_v59 = vld [vmem:[%s3036_s5 + $0x1e0] sm:$0xff]  ;;  %v1627_v56 = vld [vmem:[%s3036_s5 + $0x1e8] sm:$0xff] }
 0x202   :  { %2419 = vmatprep.subr.bf16.mxu0 %v2418_v2  ;;  %2451 = vmatprep.subr.bf16.mxu1 %v2450_v3  ;;  %v2470_v2 = vpack.c.bf16 %v1627_v56, %v1626_v59  ;;  %v1578_v3 = vld [vmem:[%s3036_s5 + $0x60] sm:$0xff] }
 0x203   :  { %v2440_v6 = vpack.c.bf16 %v1579_v4, %v1578_v3 }
 0x205   :  { %2421 = vmatpush3.bf16.msra.mxu0 %v2420_v9  ;;  %2453 = vmatpush3.bf16.msra.mxu1 %v2452_v41  ;;  %v1597_v9 = vld [vmem:[%s3036_s5 + $0xf8] sm:$0xff]  ;;  %v1628_v41 = vld [vmem:[%s3036_s5 + $0x1f0] sm:$0xff] }
 0x206   :  { %2423 = vmatprep.subr.bf16.mxu0 %v2422_v14  ;;  %2455 = vmatprep.subr.bf16.mxu1 %v2454_v15  ;;  %v2442_v11 = vpack.c.bf16 %v1597_v9, %v1596_v8  ;;  %v1580_v14 = vld [vmem:[%s3036_s5 + $0x70] sm:$0xff]  ;;  %v1581_v15 = vld [vmem:[%s3036_s5 + $0x78] sm:$0xff]  ;;  %v2474_v16 = vpack.c.bf16 %v1629_v12, %v1628_v41 }
 0x207   :  { %v2444_v17 = vpack.c.bf16 %v1581_v15, %v1580_v14 }
 0x209   :  { %2425 = vmatpush3.bf16.msra.mxu0 %v2424_v22  ;;  %2457 = vmatpush3.bf16.msra.mxu1 %v2456_v23  ;;  %v977_v22 = vrot.slane %v972_v21, %v126_v58  ;;  %v985_v23 = vrot.slane %v972_v21, %v134_v10 }
 0x20a   :  { %2427 = vmatprep.subr.bf16.mxu0 %v2426_v27  ;;  %2459 = vmatprep.subr.bf16.mxu1 %v2458_v28 }
 0x20d   :  { %2429 = vmatpush3.bf16.msra.mxu0 %v2428_v34  ;;  %2461 = vmatpush3.bf16.msra.mxu1 %v2460_v36 }
 0x20e   :  { %2431 = vmatprep.subr.bf16.mxu0 %v2430_v39  ;;  %2463 = vmatprep.subr.bf16.mxu1 %v2462_v40 }
 0x211   :  { %2433 = vmatpush3.bf16.msra.mxu0 %v2432_v47  ;;  %2465 = vmatpush3.bf16.msra.mxu1 %v2464_v48 }
 0x212   :  { %2435 = vmatprep.subr.bf16.mxu0 %v2434_v51  ;;  %2467 = vmatprep.subr.bf16.mxu1 %v2466_v52 }
 0x215   :  { %2437 = vmatpush3.bf16.msra.mxu0 %v2436_v13  ;;  %2469 = vmatpush3.bf16.msra.mxu1 %v2468_v61 }
 0x216   :  { %2439 = vmatprep.subr.bf16.mxu0 %v2438_v63  ;;  %2471 = vmatprep.subr.bf16.mxu1 %v2470_v2 }
 0x219   :  { %2441 = vmatpush3.bf16.msra.mxu0 %v2440_v6  ;;  %2473 = vmatpush3.bf16.msra.mxu1 %v2472_v0 }
 0x21a   :  { %2443 = vmatprep.subr.bf16.mxu0 %v2442_v11  ;;  %2475 = vmatprep.subr.bf16.mxu1 %v2474_v16 }
 0x21d   :  { %2445 = vmatpush3.bf16.msra.mxu0 %v2444_v17  ;;  %2477 = vmatpush3.bf16.msra.mxu1 %v2476_v20 }
 0x2d3   :  { %v1273_v27 = vpop.f32.mrb[4].mxu0  ;;  %v1557_v28 = vpop.f32.mrb[4].mxu1 }
 0x2d4   :  { %v2478_v29 = vadd.f32 %v1273_v27, %v977_v22  ;;  %v2480_v30 = vadd.f32 %v1557_v28, %v985_v23  ;;  %v1275_v25 = vpop.f32.mrb[5].mxu0  ;;  %v1559_v35 = vpop.f32.mrb[5].mxu1 }
 0x2d5   :  { %v2479_v31 = vadd.f32 %v1275_v25, %v981_v24  ;;  %v2481_v33 = vadd.f32 %v1559_v35, %v989_v26 }
 0x2d6   :  { %v1562_v58 = vmax.f32 %v2478_v29, 0.0  ;;  %v1564_v37 = vmax.f32 %v2480_v30, 0.0 }
 0x2d7   :  { %v1563_v34 = vmax.f32 %v2479_v31, 0.0  ;;  %v1565_v36 = vmax.f32 %v2481_v33, 0.0 }
 0x2d9   :  { %1701 = vmatprep.mubr.f32.mxu0 %v1563_v34  ;;  %1771 = vmatprep.mubr.f32.mxu1 %v1565_v36 }
 0x2da   :  { %1702 = vmatmul.mubr.f32.vlgmr.msra.gmra.mrb[6].mxu0 %v1562_v58  ;;  %1772 = vmatmul.mubr.f32.vlgmr.msra.gmra.mrb[6].mxu1 %v1564_v37 }
 0x3ad   :  { %v1832_v60 = vpop.f32.mrb[6].mxu0  ;;  %v1867_v10 = vpop.f32.mrb[6].mxu1 }
 0x3ae   :  { %v1833_v62 = vpop.f32.mrb[7].mxu0  ;;  %v1868_v38 = vpop.f32.mrb[7].mxu1 }
 0x3af   :  { %v1834_v39 = vadd.f32 %v1833_v62, %v1832_v60  ;;  %v1869_v40 = vadd.f32 %v1868_v38, %v1867_v10 }
 0x3b1   :  { %v1704_v43 = vadd.f32 %v1834_v39, %v1799_v57 }
 0x3b3   :  { %v1774_v44 = vadd.f32 %v1869_v40, %v1704_v43 }
 0x3b5   :  { %1777 = vst [vmem:[#allocation11] sm:$0xff] %v1774_v44 }
 0x3b6   :  { %2627 = shalt.err (!%p2624_p2)
}
 0x3b7   :  { %s2628_s6 = scalar_lea.hbm %s3038_s7, 128 }
 0x3b8   :  { %p2629_p3 = scmp.ne.s32.totalorder %s3038_s7, %s2628_s6  ;;  %p2632_p4 = scmp.lt.u32.totalorder %s2628_s6, %s3038_s7 }
 0x3ba   :  { %p2634_p5 = pnand %p2632_p4, %p2629_p3 }
 0x3bc   :  { %2637 = shalt.err (!%p2634_p5)
}
 0x3bd   :  { %1787 = dma.vmem_to_hbm [thread:$0]  %s1785_s28, 128, %s3038_s7, [#allocation4]  }
 0x3be   :  { %2644 = dma.done.wait [#allocation4], 128  }
 0x3bf   :  { %2645 = vsyncadd [#allocation4], 4294967168 }
 0x3c0   :  { %1791 = vsyncpa [#allocation3], 1 }
 0x3c1   :  { %1792 = vsyncpa [#allocation6], 1 }
 0x3c2   :  { %1793 = vsyncpa [#allocation9], 1 }
 0x3c3   :  { %1794 = vsyncpa [#allocation4], 1 }

</bundles_post_ra>
